<compile_context>
chip_gen: v6e
topology: v6e:2x2x1
jax: 0.10.0
libtpu: 0.0.40
codegen_flags: <defaults>
</compile_context>

<pallas_src>
import functools

import jax
import jax.numpy as jnp
from jax import lax
from jax.experimental import pallas as pl
from jax.experimental.pallas import tpu as pltpu

EPS = 1e-5
NEG_SLOPE = 0.1


def _leaky(x):
    return jnp.where(x > 0, x, NEG_SLOPE * x)


def _tile(total, target):
    """Largest multiple of 8 dividing `total` that is <= target (fallback: total)."""
    t = min(target, total)
    t -= t % 8
    while t >= 8:
        if total % t == 0:
            return t
        t -= 8
    return total


# ---------------------------------------------------------------------------
# Kernel 1: BN1 batch statistics of y1 = x @ w1, tiled grid reduction over M.
# ---------------------------------------------------------------------------
def stats1_kernel(x_ref, w1_ref, st_ref):
    # x_ref: (tM, Cin)   w1_ref: (Cin, Cmid)   st_ref: (2, Cmid) accumulator
    @pl.when(pl.program_id(0) == 0)
    def _():
        st_ref[...] = jnp.zeros_like(st_ref)

    y = jnp.dot(x_ref[...], w1_ref[...], preferred_element_type=jnp.float32)
    s = jnp.sum(y, axis=0, keepdims=True)
    ss = jnp.sum(y * y, axis=0, keepdims=True)
    st_ref[...] += jnp.concatenate([s, ss], axis=0)


def _stats1_call(x2d, w1, tile_m):
    M, cin = x2d.shape
    cmid = w1.shape[1]
    return pl.pallas_call(
        stats1_kernel,
        out_shape=jax.ShapeDtypeStruct((2, cmid), jnp.float32),
        grid=(M // tile_m,),
        in_specs=[
            pl.BlockSpec((tile_m, cin), lambda i: (i, 0)),
            pl.BlockSpec((cin, cmid), lambda i: (0, 0)),
        ],
        out_specs=pl.BlockSpec((2, cmid), lambda i: (0, 0)),
        compiler_params=pltpu.CompilerParams(dimension_semantics=("arbitrary",)),
    )(x2d, w1)


# ---------------------------------------------------------------------------
# Kernel 2: fused stage-1 apply (1x1 conv with BN folded + leaky) and 3x3 conv
# via per-row im2col, plus BN2 partial statistics.  Grid = (image, output row).
# ---------------------------------------------------------------------------
def conv_row_kernel(xm_ref, xc_ref, xp_ref, w1_ref, b1_ref, w2_ref,
                    y_ref, st_ref):
    # xm/xc/xp: (1,1,W,Cin) input rows h-1, h, h+1 (H-clamped in the index_map)
    # w1_ref:   (Cin, Cmid)  BN1-folded 1x1 weights;  b1_ref: (1, Cmid)
    # w2_ref:   (9*Cmid, Cout) im2col-ordered 3x3 weights
    # y_ref:    (1,1,W,Cout) pre-BN2 conv output row
    # st_ref:   (1,2,Cout) per-image sum / sum-of-squares accumulator
    h = pl.program_id(1)
    H = pl.num_programs(1)

    @pl.when(h == 0)
    def _():
        st_ref[...] = jnp.zeros_like(st_ref)

    w1 = w1_ref[...]
    b1 = b1_ref[...]

    def stage1(row, valid=None):
        y1 = _leaky(jnp.dot(row, w1, preferred_element_type=jnp.float32) + b1)
        return y1 if valid is None else y1 * valid

    # Rows outside the image contribute zeros (SAME padding acts on y1, not x).
    vm = jnp.where(h >= 1, 1.0, 0.0).astype(jnp.float32)
    vp = jnp.where(h <= H - 2, 1.0, 0.0).astype(jnp.float32)
    ym = stage1(xm_ref[0, 0], vm)          # (W, Cmid), row h-1
    yc = stage1(xc_ref[0, 0])              # (W, Cmid), row h
    yp = stage1(xp_ref[0, 0], vp)          # (W, Cmid), row h+1

    cmid = yc.shape[1]
    zrow = jnp.zeros((1, cmid), jnp.float32)

    def taps(y1a):
        left = jnp.concatenate([zrow, y1a[:-1]], axis=0)    # input col w-1
        right = jnp.concatenate([y1a[1:], zrow], axis=0)    # input col w+1
        return [left, y1a, right]

    # im2col patch matrix: one MXU matmul with K = 9*Cmid instead of 9 taps.
    patches = jnp.concatenate(taps(ym) + taps(yc) + taps(yp), axis=1)
    y2 = jnp.dot(patches, w2_ref[...], preferred_element_type=jnp.float32)

    y_ref[...] = y2.reshape(y_ref.shape).astype(y_ref.dtype)
    s = jnp.sum(y2, axis=0, keepdims=True)
    ss = jnp.sum(y2 * y2, axis=0, keepdims=True)
    st_ref[...] += jnp.concatenate([s, ss], axis=0)[None]


def _conv_stage_call(x_nhwc, w1f, b1f, w2r):
    N, H, W, cin = x_nhwc.shape
    cmid = w1f.shape[1]
    cout = w2r.shape[1]

    def row_spec(idx_fn):
        return pl.BlockSpec((1, 1, W, cin), idx_fn)

    return pl.pallas_call(
        conv_row_kernel,
        out_shape=(jax.ShapeDtypeStruct((N, H, W, cout), jnp.float32),
                   jax.ShapeDtypeStruct((N, 2, cout), jnp.float32)),
        grid=(N, H),
        in_specs=[
            row_spec(lambda n, h: (n, jnp.maximum(h - 1, 0), 0, 0)),
            row_spec(lambda n, h: (n, h, 0, 0)),
            row_spec(lambda n, h: (n, jnp.minimum(h + 1, H - 1), 0, 0)),
            pl.BlockSpec((cin, cmid), lambda n, h: (0, 0)),
            pl.BlockSpec((1, cmid), lambda n, h: (0, 0)),
            pl.BlockSpec((9 * cmid, cout), lambda n, h: (0, 0)),
        ],
        out_specs=(
            pl.BlockSpec((1, 1, W, cout), lambda n, h: (n, h, 0, 0)),
            pl.BlockSpec((1, 2, cout), lambda n, h: (n, 0, 0)),
        ),
        compiler_params=pltpu.CompilerParams(
            dimension_semantics=("parallel", "arbitrary")),
    )(x_nhwc, x_nhwc, x_nhwc, w1f, b1f, w2r)


# ---------------------------------------------------------------------------
# Kernel 3: BN2 affine + LeakyReLU (+ residual), lane-dense (rows, W*C) tiles.
# ---------------------------------------------------------------------------
def finalize_res_kernel(y_ref, sc_ref, sh_ref, x_ref, o_ref):
    y = y_ref[...] * sc_ref[...] + sh_ref[...]
    o_ref[...] = (_leaky(y) + x_ref[...]).astype(o_ref.dtype)


def finalize_nores_kernel(y_ref, sc_ref, sh_ref, o_ref):
    y = y_ref[...] * sc_ref[...] + sh_ref[...]
    o_ref[...] = _leaky(y).astype(o_ref.dtype)


def _finalize_call(y2_flat, sc_t, sh_t, x_flat, use_residual, tile_r):
    R, L = y2_flat.shape
    row_in = pl.BlockSpec((tile_r, L), lambda i: (i, 0))
    par = pl.BlockSpec((1, L), lambda i: (0, 0))
    if use_residual:
        kern = finalize_res_kernel
        in_specs = [row_in, par, par, pl.BlockSpec((tile_r, L), lambda i: (i, 0))]
        args = (y2_flat, sc_t, sh_t, x_flat)
    else:
        kern = finalize_nores_kernel
        in_specs = [row_in, par, par]
        args = (y2_flat, sc_t, sh_t)
    return pl.pallas_call(
        kern,
        out_shape=jax.ShapeDtypeStruct((R, L), jnp.float32),
        grid=(R // tile_r,),
        in_specs=in_specs,
        out_specs=pl.BlockSpec((tile_r, L), lambda i: (i, 0)),
        compiler_params=pltpu.CompilerParams(dimension_semantics=("parallel",)),
    )(*args)


# ---------------------------------------------------------------------------
# ResidualBlock forward
# ---------------------------------------------------------------------------
@functools.partial(jax.jit, static_argnames=("use_residual",))
def residual_block_forward(x_nchw, params, use_residual=True):
    x = jnp.transpose(x_nchw, (0, 2, 3, 1)).astype(jnp.float32)  # NCHW -> NHWC
    N, H, W, C = x.shape
    M = N * H * W
    R = N * H
    # 256-1024 rows/tile is ideal at real YOLOv3 sizes; 256 keeps the toy test
    # exercising multi-step pipelining as well.
    tile_m = _tile(M, 256)
    tile_r = _tile(R, 8)

    for p in params:
        w1, g1, b1 = p["w1"], p["g1"], p["b1"]
        w2, g2, b2 = p["w2"], p["g2"], p["b2"]
        cmid = w1.shape[1]

        # ---- Pass 1: BN1 batch stats (tiled grid reduction over M) --------
        st1 = _stats1_call(x.reshape(M, C), w1, tile_m)
        mean1 = st1[0:1] / M
        var1 = st1[1:2] / M - mean1 * mean1          # biased variance
        scale1 = g1 * lax.rsqrt(var1 + EPS)
        w1f = w1 * scale1                            # fold BN1 into 1x1 conv
        b1f = b1 - mean1 * scale1

        # ---- Pass 2: fused 1x1+BN1+leaky -> 3x3 conv, BN2 stats partials --
        w2r = w2.reshape(9 * cmid, C)                # (ky,kx,cin) x cout
        y2pre, st2 = _conv_stage_call(x, w1f, b1f, w2r)

        st2 = jnp.sum(st2, axis=0)                   # (2, C), sum per-image partials
        mean2 = st2[0:1] / M
        var2 = st2[1:2] / M - mean2 * mean2
        scale2 = g2 * lax.rsqrt(var2 + EPS)
        shift2 = b2 - mean2 * scale2

        # ---- Pass 3: BN2 affine + leaky + residual (lane-dense slabs) -----
        sc_t = jnp.tile(scale2, (1, W))              # column j -> channel j % C
        sh_t = jnp.tile(shift2, (1, W))
        out = _finalize_call(y2pre.reshape(R, W * C), sc_t, sh_t,
                             x.reshape(R, W * C), use_residual, tile_r)
        x = out.reshape(N, H, W, C)

    return jnp.transpose(x, (0, 3, 1, 2))            # back to NCHW


# ---------------------------------------------------------------------------
# Pure-JAX reference (PyTorch training-mode semantics)
# ---------------------------------------------------------------------------
def _bn_train_ref(y, gamma, beta):
    mean = jnp.mean(y, axis=0, keepdims=True)
    var = jnp.mean(jnp.square(y - mean), axis=0, keepdims=True)
    return (y - mean) * lax.rsqrt(var + EPS) * gamma + beta


def ref_forward(x_nchw, params, use_residual=True):
    x = jnp.transpose(x_nchw, (0, 2, 3, 1))
    N, H, W, C = x.shape
    for p in params:
        cmid = p["w1"].shape[1]
        y1 = x.reshape(-1, C) @ p["w1"]
        y1 = _leaky(_bn_train_ref(y1, p["g1"], p["b1"])).reshape(N, H, W, cmid)
        y2 = lax.conv_general_dilated(
            y1, p["w2"], (1, 1), "SAME",
            dimension_numbers=("NHWC", "HWIO", "NHWC"))
        y2 = _leaky(_bn_train_ref(y2.reshape(-1, C), p["g2"], p["b2"]))
        if use_residual:
            y2 = y2 + x.reshape(-1, C)
        x = y2.reshape(N, H, W, C)
    return jnp.transpose(x, (0, 3, 1, 2))


if __name__ == "__main__":
    key = jax.random.PRNGKey(0)
    N, C, H, W = 2, 32, 16, 16        # channels must be even (channels // 2)
    num_repeats = 2

    k_x, key = jax.random.split(key)
    x = jax.random.normal(k_x, (N, C, H, W), jnp.float32)

    params = []
    Cmid = C // 2
    for r in range(num_repeats):
        ks = jax.random.split(jax.random.fold_in(key, r), 6)
        params.append(dict(
            w1=0.1 * jax.random.normal(ks[0], (C, Cmid), jnp.float32),
            g1=1.0 + 0.1 * jax.random.normal(ks[1], (1, Cmid), jnp.float32),
            b1=0.1 * jax.random.normal(ks[2], (1, Cmid), jnp.float32),
            w2=0.1 * jax.random.normal(ks[3], (3, 3, Cmid, C), jnp.float32),  # HWIO
            g2=1.0 + 0.1 * jax.random.normal(ks[4], (1, C), jnp.float32),
            b2=0.1 * jax.random.normal(ks[5], (1, C), jnp.float32),
        ))

    for use_residual in (True, False):
        out = jax.block_until_ready(
            residual_block_forward(x, params, use_residual=use_residual))
        ref = jax.block_until_ready(
            ref_forward(x, params, use_residual=use_residual))
        assert out.shape == (N, C, H, W) and out.dtype == jnp.float32
        err = float(jnp.max(jnp.abs(out - ref)))
        assert jnp.allclose(out, ref, atol=2e-4, rtol=2e-4), err

    print("KERNEL_OK")
</pallas_src>

<mosaic_0001>
module attributes {stable_mosaic.version = 11 : i64} {
  func.func @stats1_kernel(%arg0: i32, %arg1: memref<256x32xf32, #tpu.memory_space<vmem>>, %arg2: memref<32x16xf32, #tpu.memory_space<vmem>>, %arg3: memref<2x16xf32, #tpu.memory_space<vmem>>) attributes {dimension_semantics = [#tpu.dimension_semantics<arbitrary>], iteration_bounds = array<i64: 2>, scalar_prefetch = 0 : i64, scratch_operands = 0 : i64, tpu.core_type = #tpu.core_type<tc>, window_params = [{transform_indices = @transform_0, window_bounds = array<i64: 256, 32>}, {pipeline_mode = #tpu.pipeline_mode<synchronous>, transform_indices = @transform_1, window_bounds = array<i64: 32, 16>}, {pipeline_mode = #tpu.pipeline_mode<synchronous>, transform_indices = @transform_2, window_bounds = array<i64: 2, 16>}]} {
    %c0_i32 = arith.constant 0 : i32
    %0 = arith.cmpi eq, %arg0, %c0_i32 : i32
    %1 = arith.extui %0 : i1 to i32
    %c0_i32_0 = arith.constant 0 : i32
    %2 = arith.cmpi ne, %1, %c0_i32_0 : i32
    scf.if %2 {
      %cst_10 = arith.constant 0.000000e+00 : f32
      %15 = vector.broadcast %cst_10 : f32 to vector<2x16xf32>
      %c0_11 = arith.constant 0 : index
      %c0_12 = arith.constant 0 : index
      %16 = vector.load %arg3[%c0_11, %c0_12] : memref<2x16xf32, #tpu.memory_space<vmem>>, vector<2x16xf32>
      tpu.vector_store %arg3[%c0_11, %c0_12], %15 {strides = array<i32>} : memref<2x16xf32, #tpu.memory_space<vmem>>, vector<2x16xf32>,
    } else {
    }
    %c0 = arith.constant 0 : index
    %c0_1 = arith.constant 0 : index
    %3 = vector.load %arg1[%c0, %c0_1] : memref<256x32xf32, #tpu.memory_space<vmem>>, vector<256x32xf32>
    %c0_2 = arith.constant 0 : index
    %c0_3 = arith.constant 0 : index
    %4 = vector.load %arg2[%c0_2, %c0_3] : memref<32x16xf32, #tpu.memory_space<vmem>>, vector<32x16xf32>
    %cst = arith.constant dense<0.000000e+00> : vector<256x16xf32>
    %5 = tpu.matmul %3, %4, %cst {dimension_numbers = #tpu.dot_dimension_numbers<[1], [0], [0], [1], [0, 0, 1, 1], [], []>} : vector<256x32xf32>, vector<32x16xf32>, vector<256x16xf32> -> vector<256x16xf32>
    %cst_4 = arith.constant dense<0.000000e+00> : vector<16xf32>
    %6 = vector.multi_reduction <add>, %5, %cst_4 [0] : vector<256x16xf32> to vector<16xf32>
    %7 = vector.shape_cast %6 : vector<16xf32> to vector<1x16xf32>
    %8 = arith.mulf %5, %5 : vector<256x16xf32>
    %cst_5 = arith.constant dense<0.000000e+00> : vector<16xf32>
    %9 = vector.multi_reduction <add>, %8, %cst_5 [0] : vector<256x16xf32> to vector<16xf32>
    %10 = vector.shape_cast %9 : vector<16xf32> to vector<1x16xf32>
    %c0_6 = arith.constant 0 : index
    %c0_7 = arith.constant 0 : index
    %11 = vector.load %arg3[%c0_6, %c0_7] : memref<2x16xf32, #tpu.memory_space<vmem>>, vector<2x16xf32>
    %12 = tpu.concatenate %7, %10 in 0 : vector<1x16xf32>, vector<1x16xf32> -> vector<2x16xf32>
    %13 = arith.addf %11, %12 : vector<2x16xf32>
    %c0_8 = arith.constant 0 : index
    %c0_9 = arith.constant 0 : index
    %14 = vector.load %arg3[%c0_8, %c0_9] : memref<2x16xf32, #tpu.memory_space<vmem>>, vector<2x16xf32>
    tpu.vector_store %arg3[%c0_8, %c0_9], %13 {strides = array<i32>} : memref<2x16xf32, #tpu.memory_space<vmem>>, vector<2x16xf32>,
    return
  }
  func.func @transform_0(%arg0: i32) -> (i32, i32) {
    %c0_i32 = arith.constant 0 : i32
    %c0_i32_0 = arith.constant 0 : i32
    return %arg0, %c0_i32 : i32, i32
  }
  func.func @transform_1(%arg0: i32) -> (i32, i32) {
    %c0_i32 = arith.constant 0 : i32
    %c0_i32_0 = arith.constant 0 : i32
    %c0_i32_1 = arith.constant 0 : i32
    return %c0_i32, %c0_i32_0 : i32, i32
  }
  func.func @transform_2(%arg0: i32) -> (i32, i32) {
    %c0_i32 = arith.constant 0 : i32
    %c0_i32_0 = arith.constant 0 : i32
    %c0_i32_1 = arith.constant 0 : i32
    return %c0_i32, %c0_i32_0 : i32, i32
  }
}

module attributes {stable_mosaic.version = 11 : i64} {
  func.func @conv_row_kernel(%arg0: i32, %arg1: i32, %arg2: memref<1x1x16x32xf32, #tpu.memory_space<vmem>>, %arg3: memref<1x1x16x32xf32, #tpu.memory_space<vmem>>, %arg4: memref<1x1x16x32xf32, #tpu.memory_space<vmem>>, %arg5: memref<32x16xf32, #tpu.memory_space<vmem>>, %arg6: memref<1x16xf32, #tpu.memory_space<vmem>>, %arg7: memref<144x32xf32, #tpu.memory_space<vmem>>, %arg8: memref<1x1x16x32xf32, #tpu.memory_space<vmem>>, %arg9: memref<1x2x32xf32, #tpu.memory_space<vmem>>) attributes {dimension_semantics = [#tpu.dimension_semantics<parallel>, #tpu.dimension_semantics<arbitrary>], iteration_bounds = array<i64: 2, 16>, scalar_prefetch = 0 : i64, scratch_operands = 0 : i64, tpu.core_type = #tpu.core_type<tc>, window_params = [{transform_indices = @transform_0, window_bounds = array<i64: 1, 1, 16, 32>}, {transform_indices = @transform_1, window_bounds = array<i64: 1, 1, 16, 32>}, {transform_indices = @transform_2, window_bounds = array<i64: 1, 1, 16, 32>}, {pipeline_mode = #tpu.pipeline_mode<synchronous>, transform_indices = @transform_3, window_bounds = array<i64: 32, 16>}, {pipeline_mode = #tpu.pipeline_mode<synchronous>, transform_indices = @transform_4, window_bounds = array<i64: 1, 16>}, {pipeline_mode = #tpu.pipeline_mode<synchronous>, transform_indices = @transform_5, window_bounds = array<i64: 144, 32>}, {transform_indices = @transform_6, window_bounds = array<i64: 1, 1, 16, 32>}, {transform_indices = @transform_7, window_bounds = array<i64: 1, 2, 32>}]} {
    %c0_i32 = arith.constant 0 : i32
    %0 = arith.cmpi eq, %arg1, %c0_i32 : i32
    %1 = arith.extui %0 : i1 to i32
    %c0_i32_0 = arith.constant 0 : i32
    %2 = arith.cmpi ne, %1, %c0_i32_0 : i32
    scf.if %2 {
      %cst_44 = arith.constant 0.000000e+00 : f32
      %71 = vector.broadcast %cst_44 : f32 to vector<1x2x32xf32>
      %c0_45 = arith.constant 0 : index
      %c0_46 = arith.constant 0 : index
      %c0_47 = arith.constant 0 : index
      %72 = vector.load %arg9[%c0_45, %c0_46, %c0_47] : memref<1x2x32xf32, #tpu.memory_space<vmem>>, vector<1x2x32xf32>
      tpu.vector_store %arg9[%c0_45, %c0_46, %c0_47], %71 {strides = array<i32>} : memref<1x2x32xf32, #tpu.memory_space<vmem>>, vector<1x2x32xf32>,
    } else {
    }
    %c0 = arith.constant 0 : index
    %c0_1 = arith.constant 0 : index
    %3 = vector.load %arg5[%c0, %c0_1] : memref<32x16xf32, #tpu.memory_space<vmem>>, vector<32x16xf32>
    %c0_2 = arith.constant 0 : index
    %c0_3 = arith.constant 0 : index
    %4 = vector.load %arg6[%c0_2, %c0_3] : memref<1x16xf32, #tpu.memory_space<vmem>>, vector<1x16xf32>
    %c1_i32 = arith.constant 1 : i32
    %5 = arith.cmpi sge, %arg1, %c1_i32 : i32
    %cst = arith.constant 1.000000e+00 : f32
    %cst_4 = arith.constant 0.000000e+00 : f32
    %6 = arith.select %5, %cst, %cst_4 : f32
    %c14_i32 = arith.constant 14 : i32
    %7 = arith.cmpi sle, %arg1, %c14_i32 : i32
    %cst_5 = arith.constant 1.000000e+00 : f32
    %cst_6 = arith.constant 0.000000e+00 : f32
    %8 = arith.select %7, %cst_5, %cst_6 : f32
    %c0_7 = arith.constant 0 : index
    %c0_8 = arith.constant 0 : index
    %c0_9 = arith.constant 0 : index
    %c0_10 = arith.constant 0 : index
    %9 = vector.load %arg2[%c0_7, %c0_8, %c0_9, %c0_10] : memref<1x1x16x32xf32, #tpu.memory_space<vmem>>, vector<1x1x16x32xf32>
    %10 = vector.shape_cast %9 : vector<1x1x16x32xf32> to vector<16x32xf32>
    %cst_11 = arith.constant dense<0.000000e+00> : vector<16x16xf32>
    %11 = tpu.matmul %10, %3, %cst_11 {dimension_numbers = #tpu.dot_dimension_numbers<[1], [0], [0], [1], [0, 0, 1, 1], [], []>} : vector<16x32xf32>, vector<32x16xf32>, vector<16x16xf32> -> vector<16x16xf32>
    %12 = vector.broadcast %4 : vector<1x16xf32> to vector<16x16xf32>
    %13 = arith.addf %11, %12 : vector<16x16xf32>
    %cst_12 = arith.constant 0.000000e+00 : f32
    %14 = vector.broadcast %cst_12 : f32 to vector<16x16xf32>
    %15 = arith.cmpf ogt, %13, %14 : vector<16x16xf32>
    %cst_13 = arith.constant 1.000000e-01 : f32
    %16 = vector.broadcast %cst_13 : f32 to vector<16x16xf32>
    %17 = arith.mulf %16, %13 : vector<16x16xf32>
    %18 = arith.select %15, %13, %17 : vector<16x16xi1>, vector<16x16xf32>
    %19 = vector.broadcast %6 : f32 to vector<16x16xf32>
    %20 = arith.mulf %18, %19 : vector<16x16xf32>
    %c0_14 = arith.constant 0 : index
    %c0_15 = arith.constant 0 : index
    %c0_16 = arith.constant 0 : index
    %c0_17 = arith.constant 0 : index
    %21 = vector.load %arg3[%c0_14, %c0_15, %c0_16, %c0_17] : memref<1x1x16x32xf32, #tpu.memory_space<vmem>>, vector<1x1x16x32xf32>
    %22 = vector.shape_cast %21 : vector<1x1x16x32xf32> to vector<16x32xf32>
    %cst_18 = arith.constant dense<0.000000e+00> : vector<16x16xf32>
    %23 = tpu.matmul %22, %3, %cst_18 {dimension_numbers = #tpu.dot_dimension_numbers<[1], [0], [0], [1], [0, 0, 1, 1], [], []>} : vector<16x32xf32>, vector<32x16xf32>, vector<16x16xf32> -> vector<16x16xf32>
    %24 = vector.broadcast %4 : vector<1x16xf32> to vector<16x16xf32>
    %25 = arith.addf %23, %24 : vector<16x16xf32>
    %cst_19 = arith.constant 0.000000e+00 : f32
    %26 = vector.broadcast %cst_19 : f32 to vector<16x16xf32>
    %27 = arith.cmpf ogt, %25, %26 : vector<16x16xf32>
    %cst_20 = arith.constant 1.000000e-01 : f32
    %28 = vector.broadcast %cst_20 : f32 to vector<16x16xf32>
    %29 = arith.mulf %28, %25 : vector<16x16xf32>
    %30 = arith.select %27, %25, %29 : vector<16x16xi1>, vector<16x16xf32>
    %c0_21 = arith.constant 0 : index
    %c0_22 = arith.constant 0 : index
    %c0_23 = arith.constant 0 : index
    %c0_24 = arith.constant 0 : index
    %31 = vector.load %arg4[%c0_21, %c0_22, %c0_23, %c0_24] : memref<1x1x16x32xf32, #tpu.memory_space<vmem>>, vector<1x1x16x32xf32>
    %32 = vector.shape_cast %31 : vector<1x1x16x32xf32> to vector<16x32xf32>
    %cst_25 = arith.constant dense<0.000000e+00> : vector<16x16xf32>
    %33 = tpu.matmul %32, %3, %cst_25 {dimension_numbers = #tpu.dot_dimension_numbers<[1], [0], [0], [1], [0, 0, 1, 1], [], []>} : vector<16x32xf32>, vector<32x16xf32>, vector<16x16xf32> -> vector<16x16xf32>
    %34 = vector.broadcast %4 : vector<1x16xf32> to vector<16x16xf32>
    %35 = arith.addf %33, %34 : vector<16x16xf32>
    %cst_26 = arith.constant 0.000000e+00 : f32
    %36 = vector.broadcast %cst_26 : f32 to vector<16x16xf32>
    %37 = arith.cmpf ogt, %35, %36 : vector<16x16xf32>
    %cst_27 = arith.constant 1.000000e-01 : f32
    %38 = vector.broadcast %cst_27 : f32 to vector<16x16xf32>
    %39 = arith.mulf %38, %35 : vector<16x16xf32>
    %40 = arith.select %37, %35, %39 : vector<16x16xi1>, vector<16x16xf32>
    %41 = vector.broadcast %8 : f32 to vector<16x16xf32>
    %42 = arith.mulf %40, %41 : vector<16x16xf32>
    %cst_28 = arith.constant 0.000000e+00 : f32
    %43 = vector.broadcast %cst_28 : f32 to vector<1x16xf32>
    %44 = vector.extract_strided_slice %20 {offsets = [0, 0], sizes = [15, 16], strides = [1, 1]} : vector<16x16xf32> to vector<15x16xf32>
    %45 = tpu.concatenate %43, %44 in 0 : vector<1x16xf32>, vector<15x16xf32> -> vector<16x16xf32>
    %46 = vector.extract_strided_slice %20 {offsets = [1, 0], sizes = [15, 16], strides = [1, 1]} : vector<16x16xf32> to vector<15x16xf32>
    %47 = tpu.concatenate %46, %43 in 0 : vector<15x16xf32>, vector<1x16xf32> -> vector<16x16xf32>
    %48 = vector.extract_strided_slice %30 {offsets = [0, 0], sizes = [15, 16], strides = [1, 1]} : vector<16x16xf32> to vector<15x16xf32>
    %49 = tpu.concatenate %43, %48 in 0 : vector<1x16xf32>, vector<15x16xf32> -> vector<16x16xf32>
    %50 = vector.extract_strided_slice %30 {offsets = [1, 0], sizes = [15, 16], strides = [1, 1]} : vector<16x16xf32> to vector<15x16xf32>
    %51 = tpu.concatenate %50, %43 in 0 : vector<15x16xf32>, vector<1x16xf32> -> vector<16x16xf32>
    %52 = vector.extract_strided_slice %42 {offsets = [0, 0], sizes = [15, 16], strides = [1, 1]} : vector<16x16xf32> to vector<15x16xf32>
    %53 = tpu.concatenate %43, %52 in 0 : vector<1x16xf32>, vector<15x16xf32> -> vector<16x16xf32>
    %54 = vector.extract_strided_slice %42 {offsets = [1, 0], sizes = [15, 16], strides = [1, 1]} : vector<16x16xf32> to vector<15x16xf32>
    %55 = tpu.concatenate %54, %43 in 0 : vector<15x16xf32>, vector<1x16xf32> -> vector<16x16xf32>
    %56 = tpu.concatenate %45, %20, %47, %49, %30, %51, %53, %42, %55 in 1 : vector<16x16xf32>, vector<16x16xf32>, vector<16x16xf32>, vector<16x16xf32>, vector<16x16xf32>, vector<16x16xf32>, vector<16x16xf32>, vector<16x16xf32>, vector<16x16xf32> -> vector<16x144xf32>
    %c0_29 = arith.constant 0 : index
    %c0_30 = arith.constant 0 : index
    %57 = vector.load %arg7[%c0_29, %c0_30] : memref<144x32xf32, #tpu.memory_space<vmem>>, vector<144x32xf32>
    %cst_31 = arith.constant dense<0.000000e+00> : vector<16x32xf32>
    %58 = tpu.matmul %56, %57, %cst_31 {dimension_numbers = #tpu.dot_dimension_numbers<[1], [0], [0], [1], [0, 0, 1, 1], [], []>} : vector<16x144xf32>, vector<144x32xf32>, vector<16x32xf32> -> vector<16x32xf32>
    %59 = vector.shape_cast %58 : vector<16x32xf32> to vector<1x1x16x32xf32>
    %c0_32 = arith.constant 0 : index
    %c0_33 = arith.constant 0 : index
    %c0_34 = arith.constant 0 : index
    %c0_35 = arith.constant 0 : index
    %60 = vector.load %arg8[%c0_32, %c0_33, %c0_34, %c0_35] : memref<1x1x16x32xf32, #tpu.memory_space<vmem>>, vector<1x1x16x32xf32>
    tpu.vector_store %arg8[%c0_32, %c0_33, %c0_34, %c0_35], %59 {strides = array<i32>} : memref<1x1x16x32xf32, #tpu.memory_space<vmem>>, vector<1x1x16x32xf32>,
    %cst_36 = arith.constant dense<0.000000e+00> : vector<32xf32>
    %61 = vector.multi_reduction <add>, %58, %cst_36 [0] : vector<16x32xf32> to vector<32xf32>
    %62 = vector.shape_cast %61 : vector<32xf32> to vector<1x32xf32>
    %63 = arith.mulf %58, %58 : vector<16x32xf32>
    %cst_37 = arith.constant dense<0.000000e+00> : vector<32xf32>
    %64 = vector.multi_reduction <add>, %63, %cst_37 [0] : vector<16x32xf32> to vector<32xf32>
    %65 = vector.shape_cast %64 : vector<32xf32> to vector<1x32xf32>
    %c0_38 = arith.constant 0 : index
    %c0_39 = arith.constant 0 : index
    %c0_40 = arith.constant 0 : index
    %66 = vector.load %arg9[%c0_38, %c0_39, %c0_40] : memref<1x2x32xf32, #tpu.memory_space<vmem>>, vector<1x2x32xf32>
    %67 = tpu.concatenate %62, %65 in 0 : vector<1x32xf32>, vector<1x32xf32> -> vector<2x32xf32>
    %68 = vector.shape_cast %67 : vector<2x32xf32> to vector<1x2x32xf32>
    %69 = arith.addf %66, %68 : vector<1x2x32xf32>
    %c0_41 = arith.constant 0 : index
    %c0_42 = arith.constant 0 : index
    %c0_43 = arith.constant 0 : index
    %70 = vector.load %arg9[%c0_41, %c0_42, %c0_43] : memref<1x2x32xf32, #tpu.memory_space<vmem>>, vector<1x2x32xf32>
    tpu.vector_store %arg9[%c0_41, %c0_42, %c0_43], %69 {strides = array<i32>} : memref<1x2x32xf32, #tpu.memory_space<vmem>>, vector<1x2x32xf32>,
    return
  }
  func.func @transform_0(%arg0: i32, %arg1: i32) -> (i32, i32, i32, i32) {
    %c1_i32 = arith.constant 1 : i32
    %0 = arith.subi %arg1, %c1_i32 : i32
    %c0_i32 = arith.constant 0 : i32
    %1 = arith.maxsi %0, %c0_i32 : i32
    %c0_i32_0 = arith.constant 0 : i32
    %c0_i32_1 = arith.constant 0 : i32
    %c0_i32_2 = arith.constant 0 : i32
    return %arg0, %1, %c0_i32_0, %c0_i32_1 : i32, i32, i32, i32
  }
  func.func @transform_1(%arg0: i32, %arg1: i32) -> (i32, i32, i32, i32) {
    %c0_i32 = arith.constant 0 : i32
    %c0_i32_0 = arith.constant 0 : i32
    %c0_i32_1 = arith.constant 0 : i32
    return %arg0, %arg1, %c0_i32, %c0_i32_0 : i32, i32, i32, i32
  }
  func.func @transform_2(%arg0: i32, %arg1: i32) -> (i32, i32, i32, i32) {
    %c1_i32 = arith.constant 1 : i32
    %0 = arith.addi %arg1, %c1_i32 : i32
    %c15_i32 = arith.constant 15 : i32
    %1 = arith.minsi %0, %c15_i32 : i32
    %c0_i32 = arith.constant 0 : i32
    %c0_i32_0 = arith.constant 0 : i32
    %c0_i32_1 = arith.constant 0 : i32
    return %arg0, %1, %c0_i32, %c0_i32_0 : i32, i32, i32, i32
  }
  func.func @transform_3(%arg0: i32, %arg1: i32) -> (i32, i32) {
    %c0_i32 = arith.constant 0 : i32
    %c0_i32_0 = arith.constant 0 : i32
    %c0_i32_1 = arith.constant 0 : i32
    return %c0_i32, %c0_i32_0 : i32, i32
  }
  func.func @transform_4(%arg0: i32, %arg1: i32) -> (i32, i32) {
    %c0_i32 = arith.constant 0 : i32
    %c0_i32_0 = arith.constant 0 : i32
    %c0_i32_1 = arith.constant 0 : i32
    return %c0_i32, %c0_i32_0 : i32, i32
  }
  func.func @transform_5(%arg0: i32, %arg1: i32) -> (i32, i32) {
    %c0_i32 = arith.constant 0 : i32
    %c0_i32_0 = arith.constant 0 : i32
    %c0_i32_1 = arith.constant 0 : i32
    return %c0_i32, %c0_i32_0 : i32, i32
  }
  func.func @transform_6(%arg0: i32, %arg1: i32) -> (i32, i32, i32, i32) {
    %c0_i32 = arith.constant 0 : i32
    %c0_i32_0 = arith.constant 0 : i32
    %c0_i32_1 = arith.constant 0 : i32
    return %arg0, %arg1, %c0_i32, %c0_i32_0 : i32, i32, i32, i32
  }
  func.func @transform_7(%arg0: i32, %arg1: i32) -> (i32, i32, i32) {
    %c0_i32 = arith.constant 0 : i32
    %c0_i32_0 = arith.constant 0 : i32
    %c0_i32_1 = arith.constant 0 : i32
    return %arg0, %c0_i32, %c0_i32_0 : i32, i32, i32
  }
}

module attributes {stable_mosaic.version = 11 : i64} {
  func.func @finalize_res_kernel(%arg0: i32, %arg1: memref<8x512xf32, #tpu.memory_space<vmem>>, %arg2: memref<1x512xf32, #tpu.memory_space<vmem>>, %arg3: memref<1x512xf32, #tpu.memory_space<vmem>>, %arg4: memref<8x512xf32, #tpu.memory_space<vmem>>, %arg5: memref<8x512xf32, #tpu.memory_space<vmem>>) attributes {dimension_semantics = [#tpu.dimension_semantics<parallel>], iteration_bounds = array<i64: 4>, scalar_prefetch = 0 : i64, scratch_operands = 0 : i64, tpu.core_type = #tpu.core_type<tc>, window_params = [{transform_indices = @transform_0, window_bounds = array<i64: 8, 512>}, {pipeline_mode = #tpu.pipeline_mode<synchronous>, transform_indices = @transform_1, window_bounds = array<i64: 1, 512>}, {pipeline_mode = #tpu.pipeline_mode<synchronous>, transform_indices = @transform_2, window_bounds = array<i64: 1, 512>}, {transform_indices = @transform_3, window_bounds = array<i64: 8, 512>}, {transform_indices = @transform_4, window_bounds = array<i64: 8, 512>}]} {
    %c0 = arith.constant 0 : index
    %c0_0 = arith.constant 0 : index
    %0 = vector.load %arg1[%c0, %c0_0] : memref<8x512xf32, #tpu.memory_space<vmem>>, vector<8x512xf32>
    %c0_1 = arith.constant 0 : index
    %c0_2 = arith.constant 0 : index
    %1 = vector.load %arg2[%c0_1, %c0_2] : memref<1x512xf32, #tpu.memory_space<vmem>>, vector<1x512xf32>
    %2 = vector.broadcast %1 : vector<1x512xf32> to vector<8x512xf32>
    %3 = arith.mulf %0, %2 : vector<8x512xf32>
    %c0_3 = arith.constant 0 : index
    %c0_4 = arith.constant 0 : index
    %4 = vector.load %arg3[%c0_3, %c0_4] : memref<1x512xf32, #tpu.memory_space<vmem>>, vector<1x512xf32>
    %5 = vector.broadcast %4 : vector<1x512xf32> to vector<8x512xf32>
    %6 = arith.addf %3, %5 : vector<8x512xf32>
    %cst = arith.constant 0.000000e+00 : f32
    %7 = vector.broadcast %cst : f32 to vector<8x512xf32>
    %8 = arith.cmpf ogt, %6, %7 : vector<8x512xf32>
    %cst_5 = arith.constant 1.000000e-01 : f32
    %9 = vector.broadcast %cst_5 : f32 to vector<8x512xf32>
    %10 = arith.mulf %9, %6 : vector<8x512xf32>
    %11 = arith.select %8, %6, %10 : vector<8x512xi1>, vector<8x512xf32>
    %c0_6 = arith.constant 0 : index
    %c0_7 = arith.constant 0 : index
    %12 = vector.load %arg4[%c0_6, %c0_7] : memref<8x512xf32, #tpu.memory_space<vmem>>, vector<8x512xf32>
    %13 = arith.addf %11, %12 : vector<8x512xf32>
    %c0_8 = arith.constant 0 : index
    %c0_9 = arith.constant 0 : index
    %14 = vector.load %arg5[%c0_8, %c0_9] : memref<8x512xf32, #tpu.memory_space<vmem>>, vector<8x512xf32>
    tpu.vector_store %arg5[%c0_8, %c0_9], %13 {strides = array<i32>} : memref<8x512xf32, #tpu.memory_space<vmem>>, vector<8x512xf32>,
    return
  }
  func.func @transform_0(%arg0: i32) -> (i32, i32) {
    %c0_i32 = arith.constant 0 : i32
    %c0_i32_0 = arith.constant 0 : i32
    return %arg0, %c0_i32 : i32, i32
  }
  func.func @transform_1(%arg0: i32) -> (i32, i32) {
    %c0_i32 = arith.constant 0 : i32
    %c0_i32_0 = arith.constant 0 : i32
    %c0_i32_1 = arith.constant 0 : i32
    return %c0_i32, %c0_i32_0 : i32, i32
  }
  func.func @transform_2(%arg0: i32) -> (i32, i32) {
    %c0_i32 = arith.constant 0 : i32
    %c0_i32_0 = arith.constant 0 : i32
    %c0_i32_1 = arith.constant 0 : i32
    return %c0_i32, %c0_i32_0 : i32, i32
  }
  func.func @transform_3(%arg0: i32) -> (i32, i32) {
    %c0_i32 = arith.constant 0 : i32
    %c0_i32_0 = arith.constant 0 : i32
    return %arg0, %c0_i32 : i32, i32
  }
  func.func @transform_4(%arg0: i32) -> (i32, i32) {
    %c0_i32 = arith.constant 0 : i32
    %c0_i32_0 = arith.constant 0 : i32
    return %arg0, %c0_i32 : i32, i32
  }
}

module attributes {stable_mosaic.version = 11 : i64} {
  func.func @stats1_kernel(%arg0: i32, %arg1: memref<256x32xf32, #tpu.memory_space<vmem>>, %arg2: memref<32x16xf32, #tpu.memory_space<vmem>>, %arg3: memref<2x16xf32, #tpu.memory_space<vmem>>) attributes {dimension_semantics = [#tpu.dimension_semantics<arbitrary>], iteration_bounds = array<i64: 2>, scalar_prefetch = 0 : i64, scratch_operands = 0 : i64, tpu.core_type = #tpu.core_type<tc>, window_params = [{transform_indices = @transform_0, window_bounds = array<i64: 256, 32>}, {pipeline_mode = #tpu.pipeline_mode<synchronous>, transform_indices = @transform_1, window_bounds = array<i64: 32, 16>}, {pipeline_mode = #tpu.pipeline_mode<synchronous>, transform_indices = @transform_2, window_bounds = array<i64: 2, 16>}]} {
    %c0_i32 = arith.constant 0 : i32
    %0 = arith.cmpi eq, %arg0, %c0_i32 : i32
    %1 = arith.extui %0 : i1 to i32
    %c0_i32_0 = arith.constant 0 : i32
    %2 = arith.cmpi ne, %1, %c0_i32_0 : i32
    scf.if %2 {
      %cst_10 = arith.constant 0.000000e+00 : f32
      %15 = vector.broadcast %cst_10 : f32 to vector<2x16xf32>
      %c0_11 = arith.constant 0 : index
      %c0_12 = arith.constant 0 : index
      %16 = vector.load %arg3[%c0_11, %c0_12] : memref<2x16xf32, #tpu.memory_space<vmem>>, vector<2x16xf32>
      tpu.vector_store %arg3[%c0_11, %c0_12], %15 {strides = array<i32>} : memref<2x16xf32, #tpu.memory_space<vmem>>, vector<2x16xf32>,
    } else {
    }
    %c0 = arith.constant 0 : index
    %c0_1 = arith.constant 0 : index
    %3 = vector.load %arg1[%c0, %c0_1] : memref<256x32xf32, #tpu.memory_space<vmem>>, vector<256x32xf32>
    %c0_2 = arith.constant 0 : index
    %c0_3 = arith.constant 0 : index
    %4 = vector.load %arg2[%c0_2, %c0_3] : memref<32x16xf32, #tpu.memory_space<vmem>>, vector<32x16xf32>
    %cst = arith.constant dense<0.000000e+00> : vector<256x16xf32>
    %5 = tpu.matmul %3, %4, %cst {dimension_numbers = #tpu.dot_dimension_numbers<[1], [0], [0], [1], [0, 0, 1, 1], [], []>} : vector<256x32xf32>, vector<32x16xf32>, vector<256x16xf32> -> vector<256x16xf32>
    %cst_4 = arith.constant dense<0.000000e+00> : vector<16xf32>
    %6 = vector.multi_reduction <add>, %5, %cst_4 [0] : vector<256x16xf32> to vector<16xf32>
    %7 = vector.shape_cast %6 : vector<16xf32> to vector<1x16xf32>
    %8 = arith.mulf %5, %5 : vector<256x16xf32>
    %cst_5 = arith.constant dense<0.000000e+00> : vector<16xf32>
    %9 = vector.multi_reduction <add>, %8, %cst_5 [0] : vector<256x16xf32> to vector<16xf32>
    %10 = vector.shape_cast %9 : vector<16xf32> to vector<1x16xf32>
    %c0_6 = arith.constant 0 : index
    %c0_7 = arith.constant 0 : index
    %11 = vector.load %arg3[%c0_6, %c0_7] : memref<2x16xf32, #tpu.memory_space<vmem>>, vector<2x16xf32>
    %12 = tpu.concatenate %7, %10 in 0 : vector<1x16xf32>, vector<1x16xf32> -> vector<2x16xf32>
    %13 = arith.addf %11, %12 : vector<2x16xf32>
    %c0_8 = arith.constant 0 : index
    %c0_9 = arith.constant 0 : index
    %14 = vector.load %arg3[%c0_8, %c0_9] : memref<2x16xf32, #tpu.memory_space<vmem>>, vector<2x16xf32>
    tpu.vector_store %arg3[%c0_8, %c0_9], %13 {strides = array<i32>} : memref<2x16xf32, #tpu.memory_space<vmem>>, vector<2x16xf32>,
    return
  }
  func.func @transform_0(%arg0: i32) -> (i32, i32) {
    %c0_i32 = arith.constant 0 : i32
    %c0_i32_0 = arith.constant 0 : i32
    return %arg0, %c0_i32 : i32, i32
  }
  func.func @transform_1(%arg0: i32) -> (i32, i32) {
    %c0_i32 = arith.constant 0 : i32
    %c0_i32_0 = arith.constant 0 : i32
    %c0_i32_1 = arith.constant 0 : i32
    return %c0_i32, %c0_i32_0 : i32, i32
  }
  func.func @transform_2(%arg0: i32) -> (i32, i32) {
    %c0_i32 = arith.constant 0 : i32
    %c0_i32_0 = arith.constant 0 : i32
    %c0_i32_1 = arith.constant 0 : i32
    return %c0_i32, %c0_i32_0 : i32, i32
  }
}

</mosaic_0001>

<bundles_post_ra>
// kernel: residual_block_forward.6
= control target key start
LH: loop header
LB: loop body
LE: loop exit
PB: predicated region body
PF: predicated region fallthrough
CT: control target
= control target key end

     0   :  { %7 = vsyncpa [#allocation3], 0  ;;  %s1282_s0 = inlined_call_operand.hbm [shape: f32[512,32], index: 0, kind: input, shape index: {}]   ;;  %s1283_s1 = inlined_call_operand.vmem [shape: f32[32,16], index: 1, kind: input, shape index: {}]   ;;  %s1284_s2 = inlined_call_operand.vmem [shape: f32[2,16], index: 2, kind: output, shape index: {}]  }
   0x1   :  { %9 = vsyncpa [#allocation3 + $0x1], 0  ;;  %s999_s9 = smov 0   ;;  %s1001_s10 = smov 0  }
   0x2   :  { %s1003_s11 = smov 0   ;;  %s1005_s12 = smov 0  }
   0x3 LB: > { %s730_s13 = sadd.s32 4294967295, %s978_s12   ;;  %s1019_s14 = sadd.s32 1, %s978_s12   ;;  %s978_s12 = sphi %s1005_s12, %s1293_s12   ;;  %s974_s11 = sphi %s1003_s11, %s1292_s11   ;;  %s970_s10 = sphi %s1001_s10, %s1291_s10   ;;  %s966_s9 = sphi %s999_s9, %s1290_s9  }
   0x4   : > { %s19_s15 = ssub.s32 %s978_s12, %s1019_s14  ;;  %s22_s16 = sadd.s32 1, %s974_s11 }
   0x5   : > { %p20_p0 = scmp.eq.s32.totalorder %s19_s15, 0  ;;  %p29_p1 = scmp.ne.s32.totalorder %s974_s11, %s970_s10 }
   0x6   : > { %p30_p2 = scmp.eq.s32.totalorder %s978_s12, 0  ;;  %p35_p3 = scmp.ne.s32.totalorder %s970_s10, %s966_s9 }
   0x7   : > { %s1029_s17 = scalar_select %p20_p0, %s974_s11, %s22_s16  }
   0x8   : > { %p31_p4 = por %p30_p2, %p29_p1  ;;  %p36_p5 = scmp.eq.s32.totalorder %s730_s13, 0 }
   0x9   : > { %p880_p6 = scmp.lt.s32.totalorder %s978_s12, 2  ;;  %s104_s19 = sand.u32 1, %s974_s11  }
   0xa   : > { %p1034_p7 = por %p36_p5, %p35_p3  ;;  %s733_s20 = sshll.u32 %s104_s19, 8 }
   0xb   : > { %s773_s21 = sshll.u32 %s978_s12, 12  ;;  %s108_s25 = scalar_lea.vmem [#allocation2], %s733_s20 }
   0xc   : > { %s1286_s18 = scalar_select %p1034_p7, 1, 0 }
   0xd   : > { %s1043_s24 = scalar_lea.hbm %s1282_s0, %s773_s21  ;;  %s115_s26 = sshll.u32 %s108_s25, 4  ;;  %s1045_s26 = int_to_ptr.vmem [resolvable:$true] %s115_s26 }
   0xe   : > { %p1047_p8 = pnand %p880_p6, %p31_p4  ;;  %s1052_s28 = scalar_lea.sflag [#allocation3], %s104_s19 }
   0xf   : > { %s916_s29 = scalar_lea.hbm %s1043_s24, 4096  ;;  %s921_s4 = scalar_lea.hbm %s1282_s0, 8192 }
  0x10   : > { %p917_p10 = scmp.ne.s32.totalorder %s1043_s24, %s916_s29  ;;  %p918_p11 = pneg %p1047_p8 }
  0x11   : > { %p922_p0 = scmp.lt.s32.totalorder %s1043_s24, %s1282_s0  ;;  %p923_p1 = scmp.lt.s32.totalorder %s921_s4, %s916_s29 }
  0x12   : > { %p919_p12 = pnand %p918_p11, %p917_p10 }
  0x13   : > { %p924_p2 = por %p923_p1, %p922_p0 }
  0x14   : > { %p920_p13 = pneg %p919_p12 }
  0x16   : > { %p925_p3 = pnand %p924_p2, %p920_p13 }
  0x18   : > { %928 = shalt.err (!%p925_p3)
}
  0x19   : > { %s929_s7 = scalar_lea.vmem %s1045_s26, 4096  ;;  %s980_s8 = smov [#allocation2]  }
  0x1a   : > { %p930_p4 = scmp.ne.s32.totalorder %s1045_s26, %s929_s7  ;;  %s934_s9 = sshll.u32 %s980_s8, 4  ;;  %s935_s9 = int_to_ptr.vmem [resolvable:$false] %s934_s9 }
  0x1b   : > { %s936_s15 = scalar_lea.vmem %s935_s9, 8192  ;;  %p937_p10 = scmp.lt.s32.totalorder %s1045_s26, %s935_s9 }
  0x1c   : > { %p932_p5 = pnand %p930_p4, %p918_p11  ;;  %p938_p12 = scmp.lt.s32.totalorder %s936_s15, %s929_s7 }
  0x1e   : > { %p933_p6 = pneg %p932_p5  ;;  %p939_p9 = por %p938_p12, %p937_p10 }
  0x20   : > { %p940_p7 = pnand %p939_p9, %p933_p6 }
  0x22   : > { %943 = shalt.err (!%p940_p7)
}
  0x23   : > { %s981_s16 = smov 128   ;;  %s982_s19 = smov 8  }
  0x24   : > { %879 = dma.hbm_to_vmem [thread:$0]  (!%p1047_p8), %s1043_s24, 4096, %s1045_s26, %s1052_s28, %s981_s16, %s981_s16, %s982_s19  }
  0x25   : > { %p123_p11 = scmp.lt.s32.totalorder %s978_s12, 3  ;;  %p1288_p13 = scmp.ge.s32.totalorder %s978_s12, 1 }
  0x27   : > { %p124_p0 = pnand %p1288_p13, %p123_p11 }
  0x28   : > { %s129_s20 = sand.u32 (!%p124_p0), 1, %s970_s10   ;;  %p1289_p7 = scmp.ne.s32.totalorder (!%p124_p0), %s1286_s18, 0 }
  0x29   : > { %127 = sbr.rel (%p124_p0) target bundleno = 343 (0x157), region = 28  ;;  %s737_s21 = sshll.u32 (!%p124_p0), %s129_s20, 8 }
  0x2a   : > { %s130_s22 = scalar_lea.sflag (!%p124_p0), [#allocation3], %s129_s20  ;;  %s1077_s23 = scalar_lea.vmem (!%p124_p0), [#allocation2], %s737_s21 }
  0x2e   : > { %961 = dma.done.wait (%p1289_p7), %s130_s22, 4096  }
  0x2f   : > { %963 = vsyncadd (%p1289_p7), %s130_s22, 4294963200  ;;  %p738_p9 = scmp.ne.s32.totalorder %s730_s13, 0 }
  0x31   : > { %153 = sbr.rel (%p738_p9) target bundleno = 56 (0x38), region = 36 }
  0x36   : > { %vm154_vm0 = vcmask 123904   ;;  %v983_v0 = vmov 0.0  }
  0x37   : > { %155 = vst.msk [vmem:[%s1284_s2] sm:$0x3] %vm154_vm0, %v983_v0 }
  0x38 PF: > { %v191_v1 = vld [vmem:[%s1283_s1 + $0x18] sm:$0xff]  ;;  %v190_v2 = vld [vmem:[%s1283_s1 + $0x10] sm:$0xff]  ;;  %vm192_vm1 = vcmask 261120   ;;  %v156_v3 = vld [vmem:[%s1077_s23] sm:$0xff]  ;;  %vm514_vm2 = vcmask 130048   ;;  %vm686_vm3 = vcmask 1040384  }
  0x39   : > { %810 = vmatprep.subr.mxu0 %v191_v1  ;;  %866 = vmatprep.subr.mxu1 %v191_v1  ;;  %v189_v4 = vld [vmem:[%s1283_s1 + $0x8] sm:$0xff]  ;;  %v188_v5 = vld [vmem:[%s1283_s1] sm:$0xff]  ;;  %v158_v7 = vld [vmem:[%s1077_s23 + $0x10] sm:$0xff]  ;;  %vm689_vm4 = vcmask 123904  }
  0x3a   : > { %811 = vmatpush3.msra.mxu0 %v191_v1  ;;  %818 = vmatprep.mubr.msk.f32.mxu0 %vm192_vm1, %v156_v3  ;;  %v157_v6 = vld [vmem:[%s1077_s23 + $0x8] sm:$0xff]  ;;  %v172_v8 = vld [vmem:[%s1077_s23 + $0x80] sm:$0xff]  ;;  %v174_v10 = vld [vmem:[%s1077_s23 + $0x90] sm:$0xff] }
  0x3b   : > { %812 = vmatprep.subr.mxu0 %v190_v2  ;;  %870 = vmatpush3.msra.mxu1 %v191_v1  ;;  %v173_v9 = vld [vmem:[%s1077_s23 + $0x88] sm:$0xff]  ;;  %v159_v11 = vld [vmem:[%s1077_s23 + $0x18] sm:$0xff]  ;;  %v160_v12 = vld [vmem:[%s1077_s23 + $0x20] sm:$0xff] }
  0x3c   : > { %813 = vmatpush3.msra.mxu0 %v190_v2  ;;  %867 = vmatprep.subr.mxu1 %v190_v2  ;;  %v175_v13 = vld [vmem:[%s1077_s23 + $0x98] sm:$0xff]  ;;  %v176_v14 = vld [vmem:[%s1077_s23 + $0xa0] sm:$0xff]  ;;  %v161_v15 = vld [vmem:[%s1077_s23 + $0x28] sm:$0xff] }
  0x3d   : > { %814 = vmatprep.subr.mxu0 %v189_v4  ;;  %871 = vmatpush3.msra.mxu1 %v190_v2  ;;  %v162_v16 = vld [vmem:[%s1077_s23 + $0x30] sm:$0xff]  ;;  %v177_v17 = vld [vmem:[%s1077_s23 + $0xa8] sm:$0xff]  ;;  %v163_v19 = vld [vmem:[%s1077_s23 + $0x38] sm:$0xff] }
  0x3e   : > { %815 = vmatpush3.msra.mxu0 %v189_v4  ;;  %868 = vmatprep.subr.mxu1 %v189_v4  ;;  %v178_v18 = vld [vmem:[%s1077_s23 + $0xb0] sm:$0xff]  ;;  %v164_v20 = vld [vmem:[%s1077_s23 + $0x40] sm:$0xff]  ;;  %v179_v21 = vld [vmem:[%s1077_s23 + $0xb8] sm:$0xff] }
  0x3f   : > { %816 = vmatprep.subr.mxu0 %v188_v5  ;;  %872 = vmatpush3.msra.mxu1 %v189_v4  ;;  %v180_v22 = vld [vmem:[%s1077_s23 + $0xc0] sm:$0xff]  ;;  %v165_v23 = vld [vmem:[%s1077_s23 + $0x48] sm:$0xff]  ;;  %v166_v24 = vld [vmem:[%s1077_s23 + $0x50] sm:$0xff] }
  0x40   : > { %817 = vmatpush3.msra.mxu0 %v188_v5  ;;  %869 = vmatprep.subr.mxu1 %v188_v5  ;;  %v181_v25 = vld [vmem:[%s1077_s23 + $0xc8] sm:$0xff]  ;;  %v182_v26 = vld [vmem:[%s1077_s23 + $0xd0] sm:$0xff]  ;;  %v167_v27 = vld [vmem:[%s1077_s23 + $0x58] sm:$0xff] }
  0x41   : > { %819 = vmatmul.mubr.msk.f32.vlgmr.msra.gmra.mxu0 %vm192_vm1, %v157_v6  ;;  %873 = vmatpush3.msra.mxu1 %v188_v5  ;;  %v168_v28 = vld [vmem:[%s1077_s23 + $0x60] sm:$0xff]  ;;  %v183_v29 = vld [vmem:[%s1077_s23 + $0xd8] sm:$0xff]  ;;  %v169_v31 = vld [vmem:[%s1077_s23 + $0x68] sm:$0xff] }
  0x42   : > { %821 = vmatprep.mubr.msk.f32.mxu0 %vm192_vm1, %v158_v7  ;;  %842 = vmatprep.mubr.msk.f32.mxu1 %vm192_vm1, %v172_v8  ;;  %v184_v30 = vld [vmem:[%s1077_s23 + $0xe0] sm:$0xff]  ;;  %v170_v32 = vld [vmem:[%s1077_s23 + $0x70] sm:$0xff]  ;;  %v185_v33 = vld [vmem:[%s1077_s23 + $0xe8] sm:$0xff] }
  0x43   : > { %843 = vmatmul.mubr.msk.f32.vlgmr.msra.gmra.mxu1 %vm192_vm1, %v173_v9  ;;  %v186_v34 = vld [vmem:[%s1077_s23 + $0xf0] sm:$0xff]  ;;  %v171_v35 = vld [vmem:[%s1077_s23 + $0x78] sm:$0xff] }
  0x44   : > { %845 = vmatprep.mubr.msk.f32.mxu1 %vm192_vm1, %v174_v10  ;;  %v187_v36 = vld [vmem:[%s1077_s23 + $0xf8] sm:$0xff] }
  0x45   : > { %822 = vmatmul.mubr.msk.f32.gmra.mxu0 %vm192_vm1, %v159_v11 }
  0x46   : > { %824 = vmatprep.mubr.msk.f32.mxu0 %vm192_vm1, %v160_v12 }
  0x47   : > { %846 = vmatmul.mubr.msk.f32.gmra.mxu1 %vm192_vm1, %v175_v13 }
  0x48   : > { %848 = vmatprep.mubr.msk.f32.mxu1 %vm192_vm1, %v176_v14 }
  0x49   : > { %825 = vmatmul.mubr.msk.f32.gmra.mxu0 %vm192_vm1, %v161_v15 }
  0x4a   : > { %827 = vmatprep.mubr.msk.f32.mxu0 %vm192_vm1, %v162_v16 }
  0x4b   : > { %849 = vmatmul.mubr.msk.f32.gmra.mxu1 %vm192_vm1, %v177_v17 }
  0x4c   : > { %851 = vmatprep.mubr.msk.f32.mxu1 %vm192_vm1, %v178_v18 }
  0x4d   : > { %828 = vmatmul.mubr.msk.f32.gmra.mxu0 %vm192_vm1, %v163_v19 }
  0x4e   : > { %830 = vmatprep.mubr.msk.f32.mxu0 %vm192_vm1, %v164_v20 }
  0x4f   : > { %852 = vmatmul.mubr.msk.f32.gmra.mxu1 %vm192_vm1, %v179_v21 }
  0x50   : > { %854 = vmatprep.mubr.msk.f32.mxu1 %vm192_vm1, %v180_v22 }
  0x51   : > { %831 = vmatmul.mubr.msk.f32.gmra.mxu0 %vm192_vm1, %v165_v23 }
  0x52   : > { %833 = vmatprep.mubr.msk.f32.mxu0 %vm192_vm1, %v166_v24 }
  0x53   : > { %855 = vmatmul.mubr.msk.f32.gmra.mxu1 %vm192_vm1, %v181_v25 }
  0x54   : > { %857 = vmatprep.mubr.msk.f32.mxu1 %vm192_vm1, %v182_v26 }
  0x55   : > { %834 = vmatmul.mubr.msk.f32.gmra.mxu0 %vm192_vm1, %v167_v27 }
  0x56   : > { %836 = vmatprep.mubr.msk.f32.mxu0 %vm192_vm1, %v168_v28 }
  0x57   : > { %858 = vmatmul.mubr.msk.f32.gmra.mxu1 %vm192_vm1, %v183_v29 }
  0x58   : > { %860 = vmatprep.mubr.msk.f32.mxu1 %vm192_vm1, %v184_v30 }
  0x59   : > { %837 = vmatmul.mubr.msk.f32.gmra.mxu0 %vm192_vm1, %v169_v31 }
  0x5a   : > { %839 = vmatprep.mubr.msk.f32.mxu0 %vm192_vm1, %v170_v32 }
  0x5b   : > { %861 = vmatmul.mubr.msk.f32.gmra.mxu1 %vm192_vm1, %v185_v33 }
  0x5c   : > { %863 = vmatprep.mubr.msk.f32.mxu1 %vm192_vm1, %v186_v34 }
  0x5d   : > { %840 = vmatmul.mubr.msk.f32.gmra.mxu0 %vm192_vm1, %v171_v35 }
  0x5f   : > { %864 = vmatmul.mubr.msk.f32.gmra.mxu1 %vm192_vm1, %v187_v36 }
 0x101   : > { %v820_v37 = vpop.f32.mrf.mxu0 }
 0x102   : > { %v585_v40 = vmul.f32 %v820_v37, %v820_v37  ;;  %v516_v45 = vsel %vm514_vm2, %v820_v37, 0.0 }
 0x103   : > { %v355_v38 = vpop.f32.mrf.mxu0  ;;  %v1164_v39 = vpop.f32.mrf.mxu1 }
 0x104   : > { %v515_v41 = vsel %vm514_vm2, %v355_v38, 0.0  ;;  %v584_v42 = vmul.f32 %v355_v38, %v355_v38  ;;  %v617_v50 = vsel %vm514_vm2, %v585_v40, 0.0 }
 0x105   : > { %v823_v43 = vpop.f32.mrf.mxu0  ;;  %v1167_v44 = vpop.f32.mrf.mxu1  ;;  %v517_v47 = vadd.f32 %v516_v45, %v515_v41 }
 0x106   : > { %v616_v46 = vsel %vm514_vm2, %v584_v42, 0.0  ;;  %v587_v51 = vmul.f32 %v823_v43, %v823_v43  ;;  %v520_v57 = vsel %vm514_vm2, %v823_v43, 0.0 }
 0x107   : > { %v365_v48 = vpop.f32.mrf.mxu0  ;;  %v1171_v49 = vpop.f32.mrf.mxu1  ;;  %v618_v54 = vadd.f32 %v617_v50, %v616_v46 }
 0x108   : > { %v518_v52 = vsel %vm514_vm2, %v365_v48, 0.0  ;;  %v586_v53 = vmul.f32 %v365_v48, %v365_v48  ;;  %v621_v63 = vsel %vm514_vm2, %v587_v51, 0.0 }
 0x109   : > { %v519_v55 = vadd.f32 %v518_v52, %v517_v47  ;;  %v826_v56 = vpop.f32.mrf.mxu0  ;;  %v1177_v62 = vpop.f32.mrf.mxu1 }
 0x10a   : > { %v619_v58 = vsel %vm514_vm2, %v586_v53, 0.0  ;;  %v589_v0 = vmul.f32 %v826_v56, %v826_v56  ;;  %v524_v6 = vsel %vm514_vm2, %v826_v56, 0.0 }
 0x10b   : > { %v620_v59 = vadd.f32 %v619_v58, %v618_v54  ;;  %v375_v60 = vpop.f32.mrf.mxu0  ;;  %v521_v61 = vadd.f32 %v520_v57, %v519_v55  ;;  %v1183_v11 = vpop.f32.mrf.mxu1 }
 0x10c   : > { %v522_v1 = vsel %vm514_vm2, %v375_v60, 0.0  ;;  %v588_v2 = vmul.f32 %v375_v60, %v375_v60  ;;  %v625_v12 = vsel %vm514_vm2, %v589_v0, 0.0 }
 0x10d   : > { %v523_v3 = vadd.f32 %v522_v1, %v521_v61  ;;  %v622_v4 = vadd.f32 %v621_v63, %v620_v59  ;;  %v829_v5 = vpop.f32.mrf.mxu0  ;;  %v1189_v24 = vpop.f32.mrf.mxu1 }
 0x10e   : > { %v623_v7 = vsel %vm514_vm2, %v588_v2, 0.0  ;;  %v591_v13 = vmul.f32 %v829_v5, %v829_v5  ;;  %v528_v19 = vsel %vm514_vm2, %v829_v5, 0.0 }
 0x10f   : > { %v624_v8 = vadd.f32 %v623_v7, %v622_v4  ;;  %v385_v9 = vpop.f32.mrf.mxu0  ;;  %v525_v10 = vadd.f32 %v524_v6, %v523_v3  ;;  %v1195_v37 = vpop.f32.mrf.mxu1 }
 0x110   : > { %v526_v14 = vsel %vm514_vm2, %v385_v9, 0.0  ;;  %v590_v15 = vmul.f32 %v385_v9, %v385_v9  ;;  %v629_v25 = vsel %vm514_vm2, %v591_v13, 0.0  ;;  %v600_v13 = vmul.f32 %v1167_v44, %v1167_v44 }
 0x111   : > { %v527_v16 = vadd.f32 %v526_v14, %v525_v10  ;;  %v626_v17 = vadd.f32 %v625_v12, %v624_v8  ;;  %v832_v18 = vpop.f32.mrf.mxu0  ;;  %v465_v53 = vpop.f32.mrf.mxu1 }
 0x112   : > { %v627_v20 = vsel %vm514_vm2, %v590_v15, 0.0  ;;  %v593_v26 = vmul.f32 %v832_v18, %v832_v18  ;;  %v532_v32 = vsel %vm514_vm2, %v832_v18, 0.0  ;;  %v601_v18 = vmul.f32 %v1164_v39, %v1164_v39 }
 0x113   : > { %v628_v21 = vadd.f32 %v627_v20, %v626_v17  ;;  %v395_v22 = vpop.f32.mrf.mxu0  ;;  %v529_v23 = vadd.f32 %v528_v19, %v527_v16  ;;  %v856_v3 = vpop.f32.mrf.mxu1  ;;  %v546_v19 = vsel %vm514_vm2, %v1167_v44, 0.0  ;;  %v550_v44 = vsel %vm514_vm2, %v1177_v62, 0.0 }
 0x114   : > { %v530_v27 = vsel %vm514_vm2, %v395_v22, 0.0  ;;  %v592_v28 = vmul.f32 %v395_v22, %v395_v22  ;;  %v633_v38 = vsel %vm514_vm2, %v593_v26, 0.0  ;;  %v548_v22 = vsel %vm514_vm2, %v1164_v39, 0.0 }
 0x115   : > { %v531_v29 = vadd.f32 %v530_v27, %v529_v23  ;;  %v630_v30 = vadd.f32 %v629_v25, %v628_v21  ;;  %v835_v31 = vpop.f32.mrf.mxu0  ;;  %v475_v16 = vpop.f32.mrf.mxu1  ;;  %v647_v23 = vsel %vm514_vm2, %v600_v13, 0.0  ;;  %v602_v25 = vmul.f32 %v1177_v62, %v1177_v62 }
 0x116   : > { %v631_v33 = vsel %vm514_vm2, %v592_v28, 0.0  ;;  %v595_v40 = vmul.f32 %v835_v31, %v835_v31  ;;  %v536_v47 = vsel %vm514_vm2, %v835_v31, 0.0  ;;  %v552_v39 = vsel %vm514_vm2, %v1171_v49, 0.0 }
 0x117   : > { %v632_v34 = vadd.f32 %v631_v33, %v630_v30  ;;  %v405_v35 = vpop.f32.mrf.mxu0  ;;  %v533_v36 = vadd.f32 %v532_v32, %v531_v29  ;;  %v859_v28 = vpop.f32.mrf.mxu1  ;;  %v649_v29 = vsel %vm514_vm2, %v601_v18, 0.0  ;;  %v603_v30 = vmul.f32 %v1171_v49, %v1171_v49 }
 0x118   : > { %v534_v41 = vsel %vm514_vm2, %v405_v35, 0.0  ;;  %v594_v42 = vmul.f32 %v405_v35, %v405_v35  ;;  %v637_v54 = vsel %vm514_vm2, %v595_v40, 0.0  ;;  %v651_v33 = vsel %vm514_vm2, %v602_v25, 0.0 }
 0x119   : > { %v535_v43 = vadd.f32 %v534_v41, %v533_v36  ;;  %v634_v45 = vadd.f32 %v633_v38, %v632_v34  ;;  %v838_v46 = vpop.f32.mrf.mxu0  ;;  %v604_v34 = vmul.f32 %v1189_v24, %v1189_v24  ;;  %v485_v38 = vpop.f32.mrf.mxu1  ;;  %v653_v40 = vsel %vm514_vm2, %v603_v30, 0.0 }
 0x11a   : > { %v635_v48 = vsel %vm514_vm2, %v594_v42, 0.0  ;;  %v597_v55 = vmul.f32 %v838_v46, %v838_v46  ;;  %v540_v61 = vsel %vm514_vm2, %v838_v46, 0.0  ;;  %v605_v41 = vmul.f32 %v1183_v11, %v1183_v11 }
 0x11b   : > { %v636_v50 = vadd.f32 %v635_v48, %v634_v45  ;;  %v415_v51 = vpop.f32.mrf.mxu0  ;;  %v537_v52 = vadd.f32 %v536_v47, %v535_v43  ;;  %v554_v62 = vsel %vm514_vm2, %v1189_v24, 0.0  ;;  %v556_v49 = vsel %vm514_vm2, %v1183_v11, 0.0 }
 0x11c   : > { %v538_v56 = vsel %vm514_vm2, %v415_v51, 0.0  ;;  %v596_v57 = vmul.f32 %v415_v51, %v415_v51  ;;  %v641_v4 = vsel %vm514_vm2, %v597_v55, 0.0  ;;  %v655_v45 = vsel %vm514_vm2, %v604_v34, 0.0 }
 0x11d   : > { %v539_v58 = vadd.f32 %v538_v56, %v537_v52  ;;  %v638_v59 = vadd.f32 %v637_v54, %v636_v50  ;;  %v841_v60 = vpop.f32.mrf.mxu0  ;;  %v606_v46 = vmul.f32 %v465_v53, %v465_v53  ;;  %v862_v50 = vpop.f32.mrf.mxu1  ;;  %v657_v51 = vsel %vm514_vm2, %v605_v41, 0.0 }
 0x11e   : > { %v639_v63 = vsel %vm514_vm2, %v596_v57, 0.0  ;;  %v599_v5 = vmul.f32 %v841_v60, %v841_v60  ;;  %v544_v10 = vsel %vm514_vm2, %v841_v60, 0.0  ;;  %v607_v52 = vmul.f32 %v1195_v37, %v1195_v37 }
 0x11f   : > { %v640_v0 = vadd.f32 %v639_v63, %v638_v59  ;;  %v425_v1 = vpop.f32.mrf.mxu0  ;;  %v541_v2 = vadd.f32 %v540_v61, %v539_v58  ;;  %v558_v54 = vsel %vm514_vm2, %v465_v53, 0.0  ;;  %v560_v56 = vsel %vm514_vm2, %v1195_v37, 0.0  ;;  %v495_v60 = vpop.f32.mrf.mxu1 }
 0x120   : > { %v542_v6 = vsel %vm514_vm2, %v425_v1, 0.0  ;;  %v598_v7 = vmul.f32 %v425_v1, %v425_v1  ;;  %v645_v17 = vsel %vm514_vm2, %v599_v5, 0.0  ;;  %v659_v11 = vsel %vm514_vm2, %v606_v46, 0.0 }
 0x121   : > { %v543_v8 = vadd.f32 %v542_v6, %v541_v2  ;;  %v642_v9 = vadd.f32 %v641_v4, %v640_v0  ;;  %v608_v57 = vmul.f32 %v475_v16, %v475_v16  ;;  %v661_v61 = vsel %vm514_vm2, %v607_v52, 0.0 }
 0x122   : > { %v643_v12 = vsel %vm514_vm2, %v598_v7, 0.0  ;;  %v609_v63 = vmul.f32 %v856_v3, %v856_v3  ;;  %v562_v0 = vsel %vm514_vm2, %v475_v16, 0.0  ;;  %v564_v53 = vsel %vm514_vm2, %v856_v3, 0.0  ;;  %v865_v7 = vpop.f32.mrf.mxu1 }
 0x123   : > { %v545_v14 = vadd.f32 %v544_v10, %v543_v8  ;;  %v644_v15 = vadd.f32 %v643_v12, %v642_v9  ;;  %v663_v4 = vsel %vm514_vm2, %v608_v57, 0.0  ;;  %v610_v5 = vmul.f32 %v485_v38, %v485_v38 }
 0x124   : > { %v665_v8 = vsel %vm514_vm2, %v609_v63, 0.0  ;;  %v611_v9 = vmul.f32 %v859_v28, %v859_v28  ;;  %v566_v10 = vsel %vm514_vm2, %v485_v38, 0.0  ;;  %v612_v16 = vmul.f32 %v495_v60, %v495_v60  ;;  %v505_v18 = vpop.f32.mrf.mxu1 }
 0x125   : > { %v646_v20 = vadd.f32 %v645_v17, %v644_v15  ;;  %v547_v21 = vadd.f32 %v546_v19, %v545_v14  ;;  %v568_v14 = vsel %vm514_vm2, %v859_v28, 0.0  ;;  %v667_v15 = vsel %vm514_vm2, %v610_v5, 0.0 }
 0x126   : > { %v669_v19 = vsel %vm514_vm2, %v611_v9, 0.0  ;;  %v572_v25 = vsel %vm514_vm2, %v862_v50, 0.0 }
 0x127   : > { %v648_v26 = vadd.f32 %v647_v23, %v646_v20  ;;  %v549_v27 = vadd.f32 %v548_v22, %v547_v21  ;;  %v613_v20 = vmul.f32 %v862_v50, %v862_v50  ;;  %v570_v21 = vsel %vm514_vm2, %v495_v60, 0.0 }
 0x129   : > { %v551_v31 = vadd.f32 %v550_v44, %v549_v27  ;;  %v650_v32 = vadd.f32 %v649_v29, %v648_v26  ;;  %v671_v26 = vsel %vm514_vm2, %v612_v16, 0.0  ;;  %v614_v27 = vmul.f32 %v505_v18, %v505_v18 }
 0x12a   : > { %v673_v30 = vsel %vm514_vm2, %v613_v20, 0.0  ;;  %v615_v44 = vmul.f32 %v865_v7, %v865_v7 }
 0x12b   : > { %v652_v35 = vadd.f32 %v651_v33, %v650_v32  ;;  %v553_v36 = vadd.f32 %v552_v39, %v551_v31  ;;  %v574_v31 = vsel %vm514_vm2, %v505_v18, 0.0  ;;  %v576_v33 = vsel %vm514_vm2, %v865_v7, 0.0 }
 0x12c   : > { %v675_v34 = vsel %vm514_vm2, %v614_v27, 0.0  ;;  %v677_v38 = vsel %vm514_vm2, %v615_v44, 0.0 }
 0x12d   : > { %v555_v42 = vadd.f32 %v554_v62, %v553_v36  ;;  %v654_v43 = vadd.f32 %v653_v40, %v652_v35 }
 0x12f   : > { %v656_v47 = vadd.f32 %v655_v45, %v654_v43  ;;  %v557_v48 = vadd.f32 %v556_v49, %v555_v42 }
 0x131   : > { %v559_v55 = vadd.f32 %v558_v54, %v557_v48  ;;  %v658_v24 = vadd.f32 %v657_v51, %v656_v47  ;;  %v685_v54 = vld [vmem:[%s1284_s2] sm:$0x3] }
 0x133   : > { %v660_v58 = vadd.f32 %v659_v11, %v658_v24  ;;  %v561_v59 = vadd.f32 %v560_v56, %v559_v55 }
 0x135   : > { %v563_v1 = vadd.f32 %v562_v0, %v561_v59  ;;  %v662_v2 = vadd.f32 %v661_v61, %v660_v58 }
 0x137   : > { %v664_v6 = vadd.f32 %v663_v4, %v662_v2  ;;  %v565_v37 = vadd.f32 %v564_v53, %v563_v1 }
 0x139   : > { %v567_v12 = vadd.f32 %v566_v10, %v565_v37  ;;  %v666_v13 = vadd.f32 %v665_v8, %v664_v6 }
 0x13b   : > { %v668_v17 = vadd.f32 %v667_v15, %v666_v13  ;;  %v569_v3 = vadd.f32 %v568_v14, %v567_v12 }
 0x13d   : > { %v571_v22 = vadd.f32 %v570_v21, %v569_v3  ;;  %v670_v23 = vadd.f32 %v669_v19, %v668_v17 }
 0x13f   : > { %v672_v29 = vadd.f32 %v671_v26, %v670_v23  ;;  %v573_v28 = vadd.f32 %v572_v25, %v571_v22 }
 0x141   : > { %v575_v32 = vadd.f32 %v574_v31, %v573_v28  ;;  %v674_v39 = vadd.f32 %v673_v30, %v672_v29 }
 0x143   : > { %v577_v35 = vadd.f32 %v576_v33, %v575_v32  ;;  %v676_v36 = vadd.f32 %v675_v34, %v674_v39 }
 0x145   : > { %v578_v40 = vrot.slane %v577_v35, 4  ;;  %v678_v41 = vadd.f32 %v677_v38, %v676_v36 }
 0x147   : > { %v579_v62 = vadd.f32 %v578_v40, %v577_v35  ;;  %v679_v42 = vrot.slane %v678_v41, 4 }
 0x149   : > { %v580_v43 = vrot.slane %v579_v62, 2  ;;  %v680_v49 = vadd.f32 %v679_v42, %v678_v41 }
 0x14b   : > { %v581_v45 = vadd.f32 %v580_v43, %v579_v62  ;;  %v681_v46 = vrot.slane %v680_v49, 2 }
 0x14d   : > { %v582_v47 = vrot.slane %v581_v45, 1  ;;  %v682_v48 = vadd.f32 %v681_v46, %v680_v49 }
 0x14f   : > { %v683_v50 = vrot.slane %v682_v48, 1  ;;  %v583_v51 = vadd.f32 %v582_v47, %v581_v45 }
 0x151   : > { %v684_v52 = vadd.f32 %v683_v50, %v682_v48 }
 0x153   : > { %v687_v55 = vsel %vm686_vm3, %v583_v51, %v684_v52 }
 0x154   : > { %v688_v24 = vadd.f32 %v687_v55, %v685_v54 }
 0x156   : > { %690 = vst.msk [vmem:[%s1284_s2] sm:$0x3] %vm689_vm4, %v688_v24 }
 0x157 PF: > { %p12_p8 = scmp.ge.s32.totalorder %s1019_s14, 4   ;;  %s1290_s9 = smov %s970_s10 }
 0x158   : > { %s1291_s10 = smov %s974_s11  ;;  %s1292_s11 = smov %s1029_s17 }
 0x159   : > { %s1293_s12 = smov %s1019_s14  ;;  %14 = sbr.rel (!%p12_p8) target bundleno = 3 (0x3), region = 68 }
 0x15e   :  { %702 = vsyncpa [#allocation3], 1 }
 0x15f   :  { %704 = vsyncpa [#allocation3 + $0x1], 1 }

// kernel: residual_block_forward.7
= control target key start
LH: loop header
LB: loop body
LE: loop exit
PB: predicated region body
PF: predicated region fallthrough
CT: control target
= control target key end

     0   :  { %s1381_s24 = smov 0   ;;  %s1383_s25 = smov 0   ;;  %s1624_s0 = inlined_call_operand.vmem [shape: f32[2,16,16,32], index: 0, kind: input, shape index: {}, may-alias: {0,1,2}]   ;;  %s1625_s1 = inlined_call_operand.vmem [shape: f32[2,16,16,32], index: 1, kind: input, shape index: {}, may-alias: {0,1,2}]   ;;  %s1626_s2 = inlined_call_operand.vmem [shape: f32[2,16,16,32], index: 2, kind: input, shape index: {}, may-alias: {0,1,2}]   ;;  %s1627_s3 = inlined_call_operand.vmem [shape: f32[32,16], index: 3, kind: input, shape index: {}]   ;;  %s1628_s4 = inlined_call_operand.vmem [shape: f32[1,16], index: 4, kind: input, shape index: {}]   ;;  %s1629_s5 = inlined_call_operand.vmem [shape: f32[144,32], index: 5, kind: input, shape index: {}]   ;;  %s1630_s6 = inlined_call_operand.vmem [shape: f32[2,16,16,32], index: 6, kind: output, shape index: {0}]   ;;  %s1631_s7 = inlined_call_operand.vmem [shape: f32[2,2,32], index: 7, kind: output, shape index: {1}]  }
   0x1   :  { %s1385_s26 = smov 0   ;;  %s1387_s27 = smov 0  }
   0x2   :  { %s1389_s28 = smov 0  }
   0x3 LB: > { %s27_s29 = sadd.s32 1, %s1322_s26  ;;  %s30_s30 = sadd.s32 1, %s1326_s27  ;;  %s1330_s28 = sphi %s1389_s28, %s18_s28   ;;  %s1326_s27 = sphi %s1387_s27, %s1639_s27   ;;  %s1322_s26 = sphi %s1385_s26, %s1638_s26   ;;  %s1318_s25 = sphi %s1383_s25, %s1637_s25   ;;  %s1314_s24 = sphi %s1381_s24, %s1636_s24  }
   0x4   : > { %p28_p0 = scmp.ge.s32.totalorder %s27_s29, 16  ;;  %p1135_p1 = scmp.ge.s32.totalorder %s1330_s28, 1 }
   0x5   : > { %p316_p2 = scmp.lt.s32.totalorder %s1330_s28, 33 }
   0x6   : > { %s1641_s29 = smov (%p28_p0, %s27_s29), 0  ;;  %s1643_s30 = smov (!%p28_p0, %s30_s30), %s1326_s27 }
   0x7   : > { %1632 = sst [smem:[#allocation2_spill]] %s1641_s29  ;;  %p317_p3 = pnand %p1135_p1, %p316_p2 }
   0x8   : > { %p32_p4 = scmp.ge.s32.totalorder %s1643_s30, 2  ;;  %s1136_s8 = sadd.s32 (!%p317_p3), 4294967295, %s1314_s24 }
   0x9   : > { %320 = sbr.rel (%p317_p3) target bundleno = 599 (0x257), region = 44  ;;  %p387_p5 = scmp.lt.s32.totalorder (!%p317_p3), %s1318_s25, 1 }
   0xa   : > { %s1645_s30 = smov (%p32_p4, %s1643_s30), 0  ;;  %p385_p6 = scmp.gt.s32.totalorder (!%p317_p3), %s1136_s8, 0 }
   0xb   : > { %1633 = sst [smem:[#allocation3_spill]] %s1645_s30  ;;  %p1137_p7 = scmp.lt.s32.totalorder (!%p317_p3), %s1136_s8, 15 }
   0xc   : > { %p401_p8 = scmp.lt.s32.totalorder (!%p317_p3), %s1314_s24, 15  ;;  %s408_s12 = sadd.s32 (!%p317_p3), 1, %s1314_s24 }
   0xd   : > { %p409_p9 = scmp.lt.s32.totalorder (!%p317_p3), %s408_s12, 15  ;;  %p1158_p10 = scmp.ne.s32.totalorder (!%p317_p3), %s1314_s24, 0 }
   0xe   : > { %s1647_s25 = smov (!%p387_p5, %s1318_s25), 1  ;;  %s1649_s8 = smov (!%p385_p6, %s1136_s8), 0 }
   0xf   : > { %s1143_s9 = sshll.u32 %s1647_s25, 5  ;;  %s1651_s8 = smov (!%p1137_p7, %s1649_s8), 15 }
  0x10   : > { %s402_s10 = scalar_select %p401_p8, %s1314_s24, 15 }
  0x11   : > { %s1142_s11 = sshll.u32 %s1651_s8, 1  ;;  %s1653_s12 = smov (!%p409_p9, %s408_s12), 15 }
  0x12   : > { %s393_s13 = sadd.s32 %s1143_s9, %s1142_s11  ;;  %s1145_s14 = sshll.u32 %s402_s10, 1 }
  0x13   : > { %s1144_s15 = sshll.u32 %s393_s13, 3  ;;  %s405_s16 = sadd.s32 %s1145_s14, %s1143_s9 }
  0x14   : > { %s1420_s19 = scalar_lea.vmem %s1624_s0, %s1144_s15  ;;  %s1147_s20 = sshll.u32 %s405_s16, 3 }
  0x15   : > { %s1425_s23 = scalar_lea.vmem %s1625_s1, %s1147_s20  ;;  %s1430_s8 = scalar_lea.vmem %s1630_s6, %s1147_s20 }
  0x16   : > { %s1157_s10 = sshll.u32 %s1647_s25, 1  ;;  %s1655_s12 = smov (!%p409_p9, %s1653_s12), 15 }
  0x17   : > { %s1435_s14 = scalar_lea.vmem %s1631_s7, %s1157_s10  ;;  %s1151_s15 = sshll.u32 %s1655_s12, 1 }
  0x18   : > { %s417_s16 = sadd.s32 %s1151_s15, %s1143_s9  ;;  %439 = sbr.rel (%p1158_p10) target bundleno = 31 (0x1f), region = 48 }
  0x19   : > { %s1153_s17 = sshll.u32 %s417_s16, 3 }
  0x1a   : > { %s1440_s22 = scalar_lea.vmem %s1626_s2, %s1153_s17 }
  0x1d   : > { %vm440_vm0 = vcmask 254976   ;;  %v1332_v0 = vmov 0.0  }
  0x1e   : > { %441 = vst.msk [vmem:[%s1435_s14] sm:$0x3] %vm440_vm0, %v1332_v0 }
  0x1f PF: > { %v445_v1 = vld [vmem:[%s1627_s3 + $0x18] sm:$0xff]  ;;  %v444_v2 = vld [vmem:[%s1627_s3 + $0x10] sm:$0xff]  ;;  %vm459_vm1 = vcmask 261120   ;;  %v451_v3 = vld [vmem:[%s1420_s19] sm:$0xff]  ;;  %v1333_v12 = vmov 0.0   ;;  %p447_p11 = scmp.ge.s32.totalorder %s1314_s24, 1 }
  0x20   : > { %1190 = vmatprep.subr.mxu0 %v445_v1  ;;  %v443_v4 = vld [vmem:[%s1627_s3 + $0x8] sm:$0xff]  ;;  %1198 = vmatprep.mubr.msk.f32.mxu0 %vm459_vm1, %v451_v3  ;;  %v442_v5 = vld [vmem:[%s1627_s3] sm:$0xff]  ;;  %v851_v11 = vld [vmem:[%s1629_s5 + $0x78] sm:$0xff]  ;;  %vm740_vm4 = vcmask 1046528   ;;  %vm733_vm5 = vcmask 1040384   ;;  %p449_p12 = scmp.le.s32.totalorder %s1314_s24, 14 }
  0x21   : > { %1191 = vmatpush3.msra.mxu0 %v445_v1  ;;  %v452_v6 = vld [vmem:[%s1420_s19 + $0x8] sm:$0xff]  ;;  %v550_v7 = vld [vmem:[%s1425_s23] sm:$0xff]  ;;  %859 = vmatprep.subr.mxu1 %v1333_v12  ;;  %v850_v13 = vld [vmem:[%s1629_s5 + $0x70] sm:$0xff]  ;;  %s448_s15 = scalar_select %p447_p11, 1.0, 0.0  ;;  %vm816_vm10 = vcmask 130048  }
  0x22   : > { %1192 = vmatprep.subr.mxu0 %v444_v2  ;;  %v551_v8 = vld [vmem:[%s1425_s23 + $0x8] sm:$0xff]  ;;  %v639_v9 = vld [vmem:[%s1440_s22] sm:$0xff]  ;;  %860 = vmatpush1.msra.mxu1 %v851_v11  ;;  %v847_v16 = vld [vmem:[%s1629_s5 + $0x58] sm:$0xff]  ;;  %s1334_s11 = smov 16   ;;  %s1335_s17 = smov 32   ;;  %vm821_vm11 = vcmask 392192  }
  0x23   : > { %1193 = vmatpush3.msra.mxu0 %v444_v2  ;;  %v640_v10 = vld [vmem:[%s1440_s22 + $0x8] sm:$0xff]  ;;  %861 = vmatprep.subr.mxu1 %v1333_v12  ;;  %v848_v15 = vld [vmem:[%s1629_s5 + $0x60] sm:$0xff]  ;;  %v846_v17 = vld [vmem:[%s1629_s5 + $0x50] sm:$0xff]  ;;  %v547_v29 = vstv %s448_s15  ;;  %s1560_s16 = scalar_select %p449_p12, 1.0, 0.0  ;;  %vm824_vm12 = vcmask 523264  }
  0x24   : > { %1194 = vmatprep.subr.mxu0 %v443_v4  ;;  %v849_v14 = vld [vmem:[%s1629_s5 + $0x68] sm:$0xff]  ;;  %862 = vmatpush1.msra.mxu1 %v850_v13  ;;  %v844_v19 = vld [vmem:[%s1629_s5 + $0x40] sm:$0xff]  ;;  %v843_v21 = vld [vmem:[%s1629_s5 + $0x38] sm:$0xff]  ;;  %s1336_s24 = smov 64   ;;  %s1337_s22 = smov 80   ;;  %vm827_vm13 = vcmask 654336  }
  0x25   : > { %1195 = vmatpush3.msra.mxu0 %v443_v4  ;;  %863 = vmatprep.subr.mxu1 %v1333_v12  ;;  %v845_v18 = vld [vmem:[%s1629_s5 + $0x48] sm:$0xff]  ;;  %v1505_v20 = vld [vmem:[%s1628_s4] ss:$0 sm:$0xff]  ;;  %v842_v23 = vld [vmem:[%s1629_s5 + $0x30] sm:$0xff]  ;;  %s1338_s25 = smov 48   ;;  %s1339_s29 = smov 112  }
  0x26   : > { %1196 = vmatprep.subr.mxu0 %v442_v5  ;;  %864 = vmatpush1.msra.mxu1 %v849_v14  ;;  %v841_v26 = vld [vmem:[%s1629_s5 + $0x28] sm:$0xff]  ;;  %v840_v30 = vld [vmem:[%s1629_s5 + $0x20] sm:$0xff]  ;;  %v839_v34 = vld [vmem:[%s1629_s5 + $0x18] sm:$0xff]  ;;  %s1340_s30 = smov 96   ;;  %vm830_vm14 = vcmask 785408   ;;  %vm833_vm15 = vcmask 916480  }
  0x27   : > { %1197 = vmatpush3.msra.mxu0 %v442_v5  ;;  %865 = vmatprep.subr.mxu1 %v1333_v12  ;;  %v838_v39 = vld [vmem:[%s1629_s5 + $0x10] sm:$0xff]  ;;  %v837_v46 = vld [vmem:[%s1629_s5 + $0x8] sm:$0xff]  ;;  %v836_v52 = vld [vmem:[%s1629_s5] sm:$0xff]  ;;  %vm959_vm0 = vcmask 254976  }
  0x28   : > { %1199 = vmatmul.mubr.msk.f32.vlgmr.msra.gmra.mxu0 %vm459_vm1, %v452_v6  ;;  %1201 = vmatprep.subr.mxu0 %v445_v1  ;;  %v853_v53 = vld [vmem:[%s1629_s5 + $0x88] sm:$0xff]  ;;  %v852_v0 = vld [vmem:[%s1629_s5 + $0x80] sm:$0xff]  ;;  %v728_v6 = vstv %s1560_s16 }
  0x29   : > { %1202 = vmatpush3.msra.mxu0 %v445_v1  ;;  %1209 = vmatprep.mubr.msk.f32.mxu0 %vm459_vm1, %v550_v7 }
  0x2a   : > { %1203 = vmatprep.subr.mxu0 %v444_v2  ;;  %866 = vmatpush1.msra.mxu1 %v848_v15 }
  0x2b   : > { %1204 = vmatpush3.msra.mxu0 %v444_v2  ;;  %867 = vmatprep.subr.mxu1 %v1333_v12 }
  0x2c   : > { %1205 = vmatprep.subr.mxu0 %v443_v4  ;;  %868 = vmatpush1.msra.mxu1 %v847_v16 }
  0x2d   : > { %1206 = vmatpush3.msra.mxu0 %v443_v4  ;;  %869 = vmatprep.subr.mxu1 %v1333_v12 }
  0x2e   : > { %1207 = vmatprep.subr.mxu0 %v442_v5  ;;  %870 = vmatpush1.msra.mxu1 %v846_v17 }
  0x2f   : > { %1208 = vmatpush3.msra.mxu0 %v442_v5  ;;  %871 = vmatprep.subr.mxu1 %v1333_v12 }
  0x30   : > { %1210 = vmatmul.mubr.msk.f32.vlgmr.msra.gmra.mxu0 %vm459_vm1, %v551_v8  ;;  %1212 = vmatprep.subr.mxu0 %v445_v1 }
  0x31   : > { %1213 = vmatpush3.msra.mxu0 %v445_v1  ;;  %1220 = vmatprep.mubr.msk.f32.mxu0 %vm459_vm1, %v639_v9 }
  0x32   : > { %1214 = vmatprep.subr.mxu0 %v444_v2  ;;  %872 = vmatpush1.msra.mxu1 %v845_v18 }
  0x33   : > { %1215 = vmatpush3.msra.mxu0 %v444_v2  ;;  %873 = vmatprep.subr.mxu1 %v1333_v12 }
  0x34   : > { %1216 = vmatprep.subr.mxu0 %v443_v4  ;;  %874 = vmatpush1.msra.mxu1 %v844_v19 }
  0x35   : > { %1217 = vmatpush3.msra.mxu0 %v443_v4  ;;  %875 = vmatprep.subr.mxu1 %v1333_v12 }
  0x36   : > { %1218 = vmatprep.subr.mxu0 %v442_v5  ;;  %876 = vmatpush1.msra.mxu1 %v843_v21 }
  0x37   : > { %1219 = vmatpush3.msra.mxu0 %v442_v5  ;;  %877 = vmatprep.subr.mxu1 %v1333_v12 }
  0x38   : > { %1221 = vmatmul.mubr.msk.f32.vlgmr.msra.gmra.mxu0 %vm459_vm1, %v640_v10  ;;  %878 = vmatpush1.msra.mxu1 %v842_v23 }
  0x39   : > { %879 = vmatprep.subr.mxu1 %v1333_v12 }
  0x3a   : > { %880 = vmatpush1.msra.mxu1 %v841_v26 }
  0x3b   : > { %881 = vmatprep.subr.mxu1 %v1333_v12 }
  0x3c   : > { %882 = vmatpush1.msra.mxu1 %v840_v30 }
  0x3d   : > { %883 = vmatprep.subr.mxu1 %v1333_v12 }
  0x3e   : > { %884 = vmatpush1.msra.mxu1 %v839_v34 }
  0x3f   : > { %885 = vmatprep.subr.mxu1 %v1333_v12 }
  0x40   : > { %886 = vmatpush1.msra.mxu1 %v838_v39 }
  0x41   : > { %887 = vmatprep.subr.mxu1 %v1333_v12 }
  0x42   : > { %888 = vmatpush1.msra.mxu1 %v837_v46 }
  0x43   : > { %889 = vmatprep.subr.mxu1 %v1333_v12 }
  0x44   : > { %890 = vmatpush1.msra.mxu1 %v836_v52 }
  0x45   : > { %919 = vmatprep.subr.mxu1 %v1333_v12 }
  0x46   : > { %920 = vmatpush2.msra.mxu1 %v853_v53 }
  0x47   : > { %921 = vmatprep.subr.mxu1 %v1333_v12 }
  0x48   : > { %922 = vmatpush2.msra.mxu1 %v852_v0 }
  0xe8   : > { %v1200_v22 = vpop.f32.mrf.mxu0 }
  0xe9   : > { %v538_v24 = vadd.f32 %v1200_v22, %v1505_v20 }
  0xea   : > { %v532_v25 = vpop.f32.mrf.mxu0 }
  0xeb   : > { %vm542_vm2 = vcmp.gt.f32.partialorder %v538_v24, 0.0  ;;  %v544_v27 = vmul.f32 0.1, %v538_v24  ;;  %v533_v28 = vadd.f32 %v1505_v20, %v532_v25 }
  0xed   : > { %v546_v31 = vsel %vm542_vm2, %v538_v24, %v544_v27  ;;  %vm541_vm3 = vcmp.gt.f32.partialorder %v533_v28, 0.0  ;;  %v543_v32 = vmul.f32 0.1, %v533_v28 }
  0xee   : > { %v549_v33 = vmul.f32 %v547_v29, %v546_v31 }
  0xef   : > { %v545_v35 = vsel %vm541_vm3, %v533_v28, %v543_v32 }
  0xf0   : > { %v1211_v36 = vpop.f32.mrf.mxu0  ;;  %v1528_v37 = vmul.f32 %v547_v29, %v545_v35  ;;  %v742_v38 = vrot.slane %v549_v33, 1  ;;  %v735_v42 = vrot.slane %v549_v33, 7 }
  0xf1   : > { %v630_v40 = vadd.f32 %v1211_v36, %v1505_v20 }
  0xf2   : > { %v624_v41 = vpop.f32.mrf.mxu0  ;;  %v1272_v43 = vpack.i.bf16 %v549_v33, %v1528_v37  ;;  %v741_v44 = vrot.slane %v1528_v37, 1  ;;  %v734_v45 = vrot.slane %v1528_v37, 7  ;;  %v745_v50 = vsel %vm740_vm4, %v742_v38, 0.0 }
  0xf3   : > { %vm634_vm6 = vcmp.gt.f32.partialorder %v630_v40, 0.0  ;;  %v636_v47 = vmul.f32 0.1, %v630_v40  ;;  %v625_v48 = vadd.f32 %v1505_v20, %v624_v41 }
  0xf4   : > { %1273 = vrot.lane.b32.xlu0 %v1272_v43, %s1334_s11  ;;  %v743_v49 = vsel %vm740_vm4, %v741_v44, %v742_v38  ;;  %v1549_v51 = vsel %vm733_vm5, %v734_v45, %v735_v42  ;;  %v739_v29 = vsel %vm733_vm5, 0.0, %v734_v45 }
  0xf5   : > { %vm633_vm7 = vcmp.gt.f32.partialorder %v625_v48, 0.0  ;;  %v635_v54 = vmul.f32 0.1, %v625_v48  ;;  %v1277_v55 = vpack.i.bf16 %v745_v50, %v743_v49  ;;  %v638_v56 = vsel %vm634_vm6, %v630_v40, %v636_v47 }
  0xf6   : > { %v749_v58 = vrot.slane %v638_v56, 7  ;;  %v754_v60 = vrot.slane %v638_v56, 1 }
  0xf7   : > { %v637_v57 = vsel %vm633_vm7, %v625_v48, %v635_v54 }
  0xf8   : > { %v1222_v59 = vpop.f32.mrf.mxu0  ;;  %1278 = vrot.lane.b32.xlu0 %v1277_v55, %s1335_s17  ;;  %v1282_v61 = vpack.i.bf16 %v638_v56, %v637_v57  ;;  %v748_v62 = vrot.slane %v637_v57, 7  ;;  %v753_v63 = vrot.slane %v637_v57, 1  ;;  %v757_v23 = vsel %vm740_vm4, %v754_v60, 0.0 }
  0xf9   : > { %v719_v1 = vadd.f32 %v1222_v59, %v1505_v20 }
  0xfa   : > { %v713_v2 = vpop.f32.mrf.mxu0  ;;  %1283 = vrot.lane.b32.xlu1 %v1282_v61, %s1336_s24  ;;  %v755_v3 = vsel %vm740_vm4, %v753_v63, %v754_v60  ;;  %v750_v4 = vsel %vm733_vm5, %v748_v62, %v749_v58  ;;  %v752_v5 = vsel %vm733_vm5, 0.0, %v748_v62 }
  0xfb   : > { %vm723_vm8 = vcmp.gt.f32.partialorder %v719_v1, 0.0  ;;  %v725_v7 = vmul.f32 0.1, %v719_v1  ;;  %v714_v8 = vadd.f32 %v1505_v20, %v713_v2  ;;  %v1287_v9 = vpack.i.bf16 %v750_v4, %v752_v5 }
  0xfc   : > { %797 = vrot.lane.b32.xlu0 %v755_v3, %s1337_s22 }
  0xfd   : > { %v727_v10 = vsel %vm723_vm8, %v719_v1, %v725_v7  ;;  %vm722_vm9 = vcmp.gt.f32.partialorder %v714_v8, 0.0  ;;  %v724_v11 = vmul.f32 0.1, %v714_v8 }
  0xfe   : > { %1288 = vrot.lane.b32.xlu1 %v1287_v9, %s1338_s25  ;;  %v730_v12 = vmul.f32 %v728_v6, %v727_v10 }
  0xff   : > { %v726_v13 = vsel %vm722_vm9, %v714_v8, %v724_v11 }
 0x100   : > { %v729_v14 = vmul.f32 %v728_v6, %v726_v13  ;;  %v766_v15 = vrot.slane %v730_v12, 1  ;;  %v761_v18 = vrot.slane %v730_v12, 7 }
 0x102   : > { %810 = vrot.lane.b32.xlu0 %v729_v14, %s1339_s29  ;;  %v765_v16 = vrot.slane %v729_v14, 1  ;;  %v760_v17 = vrot.slane %v729_v14, 7  ;;  %v769_v19 = vsel %vm740_vm4, %v766_v15, 0.0 }
 0x104   : > { %v767_v20 = vsel %vm740_vm4, %v765_v16, %v766_v15  ;;  %v764_v21 = vsel %vm733_vm5, 0.0, %v760_v17  ;;  %v762_v22 = vsel %vm733_vm5, %v760_v17, %v761_v18  ;;  %v956_v17 = vld [vmem:[%s1435_s14] sm:$0x3] }
 0x105   : > { %1166 = vmatprep.mubr.msk.f32.mxu1 %vm816_vm10, %v767_v20  ;;  %804 = vrot.lane.b32.xlu1 %v764_v21, %s1340_s30 }
 0x106   : > { %806 = vrot.lane.b32.xlu0 %v762_v22, %s1340_s30 }
 0x109   : > { %799 = vrot.lane.b32.xlu1 %v757_v23, %s1337_s22 }
 0x10d   : > { %812 = vrot.lane.b32.xlu1 %v730_v12, %s1339_s29 }
 0x166   : > { %v1274_v24 = vpop.permute.xlu0 %1273 }
 0x167   : > { %v1275_v27 = vunpack.i.l.bf16 %v1274_v24  ;;  %v1276_v33 = vunpack.i.h.bf16 %v1274_v24 }
 0x169   : > { %v817_v31 = vsel %vm816_vm10, %v739_v29, %v1275_v27  ;;  %v818_v41 = vsel %vm816_vm10, %v1549_v51, %v1276_v33 }
 0x16a   : > { %v1279_v25 = vpop.permute.xlu0 %1278 }
 0x16b   : > { %v1280_v28 = vunpack.i.l.bf16 %v1279_v25  ;;  %v1281_v36 = vunpack.i.h.bf16 %v1279_v25 }
 0x16c   : > { %v1284_v26 = vpop.permute.xlu1 %1283 }
 0x16d   : > { %v819_v34 = vsel %vm459_vm1, %v817_v31, %v1280_v28  ;;  %v1285_v35 = vunpack.i.l.bf16 %v1284_v26  ;;  %v820_v42 = vsel %vm459_vm1, %v818_v41, %v1281_v36  ;;  %v1286_v48 = vunpack.i.h.bf16 %v1284_v26 }
 0x16e   : > { %v798_v39 = vpop.permute.xlu0 %797 }
 0x170   : > { %v1289_v30 = vpop.permute.xlu1 %1288 }
 0x171   : > { %v1290_v32 = vunpack.i.l.bf16 %v1289_v30  ;;  %v1291_v40 = vunpack.i.h.bf16 %v1289_v30 }
 0x173   : > { %v822_v38 = vsel %vm821_vm11, %v819_v34, %v1290_v32  ;;  %v823_v47 = vsel %vm821_vm11, %v820_v42, %v1291_v40 }
 0x174   : > { %v825_v37 = vsel %vm824_vm12, %v822_v38, %v1285_v35  ;;  %v811_v45 = vpop.permute.xlu0 %810  ;;  %v826_v51 = vsel %vm824_vm12, %v823_v47, %v1286_v48 }
 0x175   : > { %v828_v44 = vsel %vm827_vm13, %v825_v37, %v798_v39 }
 0x177   : > { %v805_v43 = vpop.permute.xlu1 %804 }
 0x178   : > { %v831_v46 = vsel %vm830_vm14, %v828_v44, %v805_v43  ;;  %v807_v53 = vpop.permute.xlu0 %806 }
 0x179   : > { %v834_v49 = vsel %vm833_vm15, %v831_v46, %v811_v45 }
 0x17a   : > { %924 = vmatmul.mubr.f32.vlgmr.msra.gmra.mxu1 %v834_v49 }
 0x17b   : > { %v800_v50 = vpop.permute.xlu1 %799  ;;  %1167 = vmatprep.mubr.msk.f32.mxu1 %vm816_vm10, %v769_v19 }
 0x17c   : > { %v829_v52 = vsel %vm827_vm13, %v826_v51, %v800_v50 }
 0x17d   : > { %v832_v55 = vsel %vm830_vm14, %v829_v52, %v807_v53 }
 0x17f   : > { %v813_v54 = vpop.permute.xlu1 %812 }
 0x180   : > { %v835_v56 = vsel %vm833_vm15, %v832_v55, %v813_v54 }
 0x181   : > { %929 = vmatmul.mubr.f32.gmra.mxu1 %v835_v56 }
 0x23a   : > { %v925_v57 = vpop.f32.mrf.mxu1 }
 0x23b   : > { %934 = vst.msk [vmem:[%s1430_s8] sm:$0xff] %vm459_vm1, %v925_v57  ;;  %v945_v59 = vmul.f32 %v925_v57, %v925_v57  ;;  %v936_v61 = vsel %vm459_vm1, %v925_v57, 0.0 }
 0x23c   : > { %v927_v58 = vpop.f32.mrf.mxu1 }
 0x23d   : > { %v947_v2 = vsel %vm459_vm1, %v945_v59, 0.0 }
 0x241   : > { %v930_v60 = vpop.f32.mrf.mxu1 }
 0x242   : > { %935 = vst.msk [vmem:[%s1430_s8 + $0x8] sm:$0xff] %vm459_vm1, %v930_v60  ;;  %v937_v62 = vsel %vm459_vm1, %v930_v60, 0.0  ;;  %v946_v63 = vmul.f32 %v930_v60, %v930_v60 }
 0x243   : > { %v938_v0 = vadd.f32 %v937_v62, %v936_v61  ;;  %v932_v1 = vpop.f32.mrf.mxu1 }
 0x244   : > { %v948_v3 = vsel %vm459_vm1, %v946_v63, 0.0 }
 0x245   : > { %v939_v4 = vrot.slane %v938_v0, 4  ;;  %v949_v5 = vadd.f32 %v948_v3, %v947_v2 }
 0x247   : > { %v940_v6 = vadd.f32 %v939_v4, %v938_v0  ;;  %v950_v7 = vrot.slane %v949_v5, 4 }
 0x249   : > { %v941_v8 = vrot.slane %v940_v6, 2  ;;  %v951_v9 = vadd.f32 %v950_v7, %v949_v5 }
 0x24b   : > { %v942_v10 = vadd.f32 %v941_v8, %v940_v6  ;;  %v952_v11 = vrot.slane %v951_v9, 2 }
 0x24d   : > { %v943_v12 = vrot.slane %v942_v10, 1  ;;  %v953_v13 = vadd.f32 %v952_v11, %v951_v9 }
 0x24f   : > { %v954_v14 = vrot.slane %v953_v13, 1  ;;  %v944_v15 = vadd.f32 %v943_v12, %v942_v10 }
 0x251   : > { %v955_v16 = vadd.f32 %v954_v14, %v953_v13 }
 0x253   : > { %v957_v18 = vsel %vm733_vm5, %v944_v15, %v955_v16 }
 0x254   : > { %v958_v19 = vadd.f32 %v957_v18, %v956_v17 }
 0x256   : > { %960 = vst.msk [vmem:[%s1435_s14] sm:$0x3] %vm959_vm0, %v958_v19 }
 0x257 PF: > { %s18_s28 = sadd.s32 1, %s1330_s28   ;;  %s1634_s8 = sld [smem:[#allocation2_spill]] }
 0x258   : > { %p15_p13 = scmp.ge.s32.totalorder %s18_s28, 34   ;;  %s1635_s9 = sld [smem:[#allocation3_spill]] }
 0x259   : > { %s1636_s24 = smov %s1322_s26  ;;  %s1637_s25 = smov %s1326_s27 }
 0x25a   :  { %17 = sbr.rel (!%p15_p13) target bundleno = 3 (0x3), region = 96 }
 0x25d   : > { %s1638_s26 = smov %s1634_s8 }
 0x25e   : > { %s1639_s27 = smov %s1635_s9 }

// kernel: residual_block_forward.8
= control target key start
LH: loop header
LB: loop body
LE: loop exit
PB: predicated region body
PF: predicated region fallthrough
CT: control target
= control target key end

     0   :  { %s422_s15 = smov 0   ;;  %s453_s0 = inlined_call_operand.vmem [shape: f32[32,512], index: 0, kind: input, shape index: {}]   ;;  %s454_s1 = inlined_call_operand.vmem [shape: f32[1,512], index: 1, kind: input, shape index: {}]   ;;  %s455_s2 = inlined_call_operand.vmem [shape: f32[1,512], index: 2, kind: input, shape index: {}]   ;;  %s456_s3 = inlined_call_operand.vmem [shape: f32[32,512], index: 3, kind: input, shape index: {}]   ;;  %s457_s4 = inlined_call_operand.vmem [shape: f32[32,512], index: 4, kind: output, shape index: {}]  }
   0x1 LB: > { %s365_s16 = sadd.s32 4294967295, %s395_s15   ;;  %p369_p0 = scmp.ge.s32.totalorder %s395_s15, 1  ;;  %s395_s15 = sphi %s422_s15, %s14_s15  }
   0x2   : > { %p172_p1 = scmp.lt.s32.totalorder %s395_s15, 5 }
   0x4   : > { %p173_p2 = pnand %p369_p0, %p172_p1 }
   0x5   : > { %p203_p3 = scmp.lt.s32.totalorder (!%p173_p2), %s365_s16, 3 }
   0x6   : > { %176 = sbr.rel (%p173_p2) target bundleno = 30 (0x1e), region = 36 }
   0xb   : > { %v224_v0 = vlaneseq  ;;  %s459_s16 = smov (!%p203_p3, %s365_s16), 3  ;;  %v222_v2 = vld [vmem:[%s454_s1] sm:$0xf] }
   0xc   : > { %v248_v3 = vld [vmem:[%s455_s2] sm:$0xf]  ;;  %s436_s21 = sshll.u32 %s459_s16, 5 }
   0xd   : > { %v225_v1 = vshrl.u32 %v224_v0, 7  ;;  %s207_s24 = scalar_lea.vmem %s453_s0, %s436_s21  ;;  %s212_s27 = scalar_lea.vmem %s456_s3, %s436_s21 }
   0xe   : > { %v218_v8 = vld [vmem:[%s207_s24] sm:$0xff]  ;;  %v219_v11 = vld [vmem:[%s207_s24 + $0x8] sm:$0xff]  ;;  %v220_v14 = vld [vmem:[%s207_s24 + $0x10] sm:$0xff]  ;;  %s217_s30 = scalar_lea.vmem %s457_s4, %s436_s21 }
   0xf   : > { %v226_v4 = vsub.s32 0, %v225_v1  ;;  %v230_v5 = vsub.s32 1, %v225_v1  ;;  %v234_v6 = vsub.s32 2, %v225_v1  ;;  %v238_v7 = vsub.s32 3, %v225_v1  ;;  %v221_v21 = vld [vmem:[%s207_s24 + $0x18] sm:$0xff]  ;;  %v286_v25 = vld [vmem:[%s212_s27] sm:$0xff] }
  0x10   : > { %v287_v27 = vld [vmem:[%s212_s27 + $0x8] sm:$0xff]  ;;  %v288_v29 = vld [vmem:[%s212_s27 + $0x10] sm:$0xff]  ;;  %v289_v31 = vld [vmem:[%s212_s27 + $0x18] sm:$0xff] }
  0x11   : > { %v227_v9 = vrot.slane %v222_v2, %v226_v4  ;;  %v253_v10 = vrot.slane %v248_v3, %v226_v4  ;;  %v231_v12 = vrot.slane %v222_v2, %v230_v5  ;;  %v257_v13 = vrot.slane %v248_v3, %v230_v5 }
  0x12   : > { %v235_v15 = vrot.slane %v222_v2, %v234_v6  ;;  %v261_v16 = vrot.slane %v248_v3, %v234_v6  ;;  %v239_v17 = vrot.slane %v222_v2, %v238_v7  ;;  %v265_v18 = vrot.slane %v248_v3, %v238_v7 }
  0x13   : > { %v244_v19 = vmul.f32 %v227_v9, %v218_v8  ;;  %v245_v20 = vmul.f32 %v231_v12, %v219_v11 }
  0x14   : > { %v246_v22 = vmul.f32 %v235_v15, %v220_v14  ;;  %v247_v23 = vmul.f32 %v239_v17, %v221_v21 }
  0x15   : > { %v270_v24 = vadd.f32 %v253_v10, %v244_v19  ;;  %v271_v26 = vadd.f32 %v257_v13, %v245_v20 }
  0x16   : > { %v272_v28 = vadd.f32 %v261_v16, %v246_v22  ;;  %v273_v30 = vadd.f32 %v265_v18, %v247_v23 }
  0x17   : > { %vm274_vm0 = vcmp.gt.f32.partialorder %v270_v24, 0.0  ;;  %v278_v32 = vmul.f32 0.1, %v270_v24  ;;  %vm275_vm1 = vcmp.gt.f32.partialorder %v271_v26, 0.0  ;;  %v279_v33 = vmul.f32 0.1, %v271_v26 }
  0x18   : > { %vm276_vm2 = vcmp.gt.f32.partialorder %v272_v28, 0.0  ;;  %v280_v34 = vmul.f32 0.1, %v272_v28  ;;  %vm277_vm3 = vcmp.gt.f32.partialorder %v273_v30, 0.0  ;;  %v281_v35 = vmul.f32 0.1, %v273_v30 }
  0x19   : > { %v282_v36 = vsel %vm274_vm0, %v270_v24, %v278_v32  ;;  %v283_v37 = vsel %vm275_vm1, %v271_v26, %v279_v33 }
  0x1a   : > { %v290_v38 = vadd.f32 %v286_v25, %v282_v36  ;;  %v291_v39 = vadd.f32 %v287_v27, %v283_v37  ;;  %v284_v40 = vsel %vm276_vm2, %v272_v28, %v280_v34  ;;  %v285_v41 = vsel %vm277_vm3, %v273_v30, %v281_v35 }
  0x1b   : > { %v292_v42 = vadd.f32 %v288_v29, %v284_v40  ;;  %v293_v43 = vadd.f32 %v289_v31, %v285_v41 }
  0x1c   : > { %294 = vst [vmem:[%s217_s30] sm:$0xff] %v290_v38  ;;  %295 = vst [vmem:[%s217_s30 + $0x8] sm:$0xff] %v291_v39 }
  0x1d   : > { %296 = vst [vmem:[%s217_s30 + $0x10] sm:$0xff] %v292_v42  ;;  %297 = vst [vmem:[%s217_s30 + $0x18] sm:$0xff] %v293_v43 }
  0x1e PF: > { %s14_s15 = sadd.s32 1, %s395_s15  }
  0x1f   : > { %p11_p4 = scmp.ge.s32.totalorder %s14_s15, 6  }
  0x21   :  { %13 = sbr.rel (!%p11_p4) target bundleno = 1 (0x1), region = 69 }

// kernel: residual_block_forward.9
= control target key start
LH: loop header
LB: loop body
LE: loop exit
PB: predicated region body
PF: predicated region fallthrough
CT: control target
= control target key end

     0   :  { %s874_s9 = smov 0   ;;  %s1074_s0 = inlined_call_operand.vmem [shape: f32[512,32], index: 0, kind: input, shape index: {}]   ;;  %s1075_s1 = inlined_call_operand.vmem [shape: f32[32,16], index: 1, kind: input, shape index: {}]   ;;  %s1076_s2 = inlined_call_operand.vmem [shape: f32[2,16], index: 2, kind: output, shape index: {}]  }
   0x1 LB: > { %s700_s10 = sadd.s32 4294967295, %s856_s9   ;;  %p703_p0 = scmp.ge.s32.totalorder %s856_s9, 1  ;;  %s856_s9 = sphi %s874_s9, %s12_s9  }
   0x2   : > { %p108_p1 = scmp.lt.s32.totalorder %s856_s9, 3 }
   0x4   : > { %p109_p2 = pnand %p703_p0, %p108_p1 }
   0x5   : > { %s704_s11 = sshll.u32 (!%p109_p2), %s700_s10, 5  ;;  %p706_p4 = scmp.ne.s32.totalorder (!%p109_p2), %s700_s10, 0 }
   0x6   : > { %112 = sbr.rel (%p109_p2) target bundleno = 305 (0x131), region = 28  ;;  %p126_p3 = scmp.lt.s32.totalorder (!%p109_p2), %s704_s11, 63 }
   0xb   : > { %s1078_s11 = smov (!%p126_p3, %s704_s11), 63  ;;  %134 = sbr.rel (%p706_p4) target bundleno = 18 (0x12), region = 32 }
   0xc   : > { %s705_s12 = sshll.u32 %s1078_s11, 3 }
   0xd   : > { %s885_s15 = scalar_lea.vmem %s1074_s0, %s705_s12 }
  0x10   : > { %vm135_vm0 = vcmask 123904   ;;  %v858_v0 = vmov 0.0  }
  0x11   : > { %136 = vst.msk [vmem:[%s1076_s2] sm:$0x3] %vm135_vm0, %v858_v0 }
  0x12 PF: > { %v172_v1 = vld [vmem:[%s1075_s1 + $0x18] sm:$0xff]  ;;  %v171_v2 = vld [vmem:[%s1075_s1 + $0x10] sm:$0xff]  ;;  %vm173_vm1 = vcmask 261120   ;;  %v137_v3 = vld [vmem:[%s885_s15] sm:$0xff]  ;;  %vm495_vm2 = vcmask 130048   ;;  %vm667_vm3 = vcmask 1040384  }
  0x13   : > { %777 = vmatprep.subr.mxu0 %v172_v1  ;;  %833 = vmatprep.subr.mxu1 %v172_v1  ;;  %v170_v4 = vld [vmem:[%s1075_s1 + $0x8] sm:$0xff]  ;;  %v169_v5 = vld [vmem:[%s1075_s1] sm:$0xff]  ;;  %v139_v7 = vld [vmem:[%s885_s15 + $0x10] sm:$0xff]  ;;  %vm670_vm4 = vcmask 123904  }
  0x14   : > { %778 = vmatpush3.msra.mxu0 %v172_v1  ;;  %785 = vmatprep.mubr.msk.f32.mxu0 %vm173_vm1, %v137_v3  ;;  %v138_v6 = vld [vmem:[%s885_s15 + $0x8] sm:$0xff]  ;;  %v153_v8 = vld [vmem:[%s885_s15 + $0x80] sm:$0xff]  ;;  %v155_v10 = vld [vmem:[%s885_s15 + $0x90] sm:$0xff] }
  0x15   : > { %779 = vmatprep.subr.mxu0 %v171_v2  ;;  %837 = vmatpush3.msra.mxu1 %v172_v1  ;;  %v154_v9 = vld [vmem:[%s885_s15 + $0x88] sm:$0xff]  ;;  %v140_v11 = vld [vmem:[%s885_s15 + $0x18] sm:$0xff]  ;;  %v141_v12 = vld [vmem:[%s885_s15 + $0x20] sm:$0xff] }
  0x16   : > { %780 = vmatpush3.msra.mxu0 %v171_v2  ;;  %834 = vmatprep.subr.mxu1 %v171_v2  ;;  %v156_v13 = vld [vmem:[%s885_s15 + $0x98] sm:$0xff]  ;;  %v157_v14 = vld [vmem:[%s885_s15 + $0xa0] sm:$0xff]  ;;  %v142_v15 = vld [vmem:[%s885_s15 + $0x28] sm:$0xff] }
  0x17   : > { %781 = vmatprep.subr.mxu0 %v170_v4  ;;  %838 = vmatpush3.msra.mxu1 %v171_v2  ;;  %v143_v16 = vld [vmem:[%s885_s15 + $0x30] sm:$0xff]  ;;  %v158_v17 = vld [vmem:[%s885_s15 + $0xa8] sm:$0xff]  ;;  %v144_v19 = vld [vmem:[%s885_s15 + $0x38] sm:$0xff] }
  0x18   : > { %782 = vmatpush3.msra.mxu0 %v170_v4  ;;  %835 = vmatprep.subr.mxu1 %v170_v4  ;;  %v159_v18 = vld [vmem:[%s885_s15 + $0xb0] sm:$0xff]  ;;  %v145_v20 = vld [vmem:[%s885_s15 + $0x40] sm:$0xff]  ;;  %v160_v21 = vld [vmem:[%s885_s15 + $0xb8] sm:$0xff] }
  0x19   : > { %783 = vmatprep.subr.mxu0 %v169_v5  ;;  %839 = vmatpush3.msra.mxu1 %v170_v4  ;;  %v161_v22 = vld [vmem:[%s885_s15 + $0xc0] sm:$0xff]  ;;  %v146_v23 = vld [vmem:[%s885_s15 + $0x48] sm:$0xff]  ;;  %v147_v24 = vld [vmem:[%s885_s15 + $0x50] sm:$0xff] }
  0x1a   : > { %784 = vmatpush3.msra.mxu0 %v169_v5  ;;  %836 = vmatprep.subr.mxu1 %v169_v5  ;;  %v162_v25 = vld [vmem:[%s885_s15 + $0xc8] sm:$0xff]  ;;  %v163_v26 = vld [vmem:[%s885_s15 + $0xd0] sm:$0xff]  ;;  %v148_v27 = vld [vmem:[%s885_s15 + $0x58] sm:$0xff] }
  0x1b   : > { %786 = vmatmul.mubr.msk.f32.vlgmr.msra.gmra.mxu0 %vm173_vm1, %v138_v6  ;;  %840 = vmatpush3.msra.mxu1 %v169_v5  ;;  %v149_v28 = vld [vmem:[%s885_s15 + $0x60] sm:$0xff]  ;;  %v164_v29 = vld [vmem:[%s885_s15 + $0xd8] sm:$0xff]  ;;  %v150_v31 = vld [vmem:[%s885_s15 + $0x68] sm:$0xff] }
  0x1c   : > { %788 = vmatprep.mubr.msk.f32.mxu0 %vm173_vm1, %v139_v7  ;;  %809 = vmatprep.mubr.msk.f32.mxu1 %vm173_vm1, %v153_v8  ;;  %v165_v30 = vld [vmem:[%s885_s15 + $0xe0] sm:$0xff]  ;;  %v151_v32 = vld [vmem:[%s885_s15 + $0x70] sm:$0xff]  ;;  %v166_v33 = vld [vmem:[%s885_s15 + $0xe8] sm:$0xff] }
  0x1d   : > { %810 = vmatmul.mubr.msk.f32.vlgmr.msra.gmra.mxu1 %vm173_vm1, %v154_v9  ;;  %v167_v34 = vld [vmem:[%s885_s15 + $0xf0] sm:$0xff]  ;;  %v152_v35 = vld [vmem:[%s885_s15 + $0x78] sm:$0xff] }
  0x1e   : > { %812 = vmatprep.mubr.msk.f32.mxu1 %vm173_vm1, %v155_v10  ;;  %v168_v36 = vld [vmem:[%s885_s15 + $0xf8] sm:$0xff] }
  0x1f   : > { %789 = vmatmul.mubr.msk.f32.gmra.mxu0 %vm173_vm1, %v140_v11 }
  0x20   : > { %791 = vmatprep.mubr.msk.f32.mxu0 %vm173_vm1, %v141_v12 }
  0x21   : > { %813 = vmatmul.mubr.msk.f32.gmra.mxu1 %vm173_vm1, %v156_v13 }
  0x22   : > { %815 = vmatprep.mubr.msk.f32.mxu1 %vm173_vm1, %v157_v14 }
  0x23   : > { %792 = vmatmul.mubr.msk.f32.gmra.mxu0 %vm173_vm1, %v142_v15 }
  0x24   : > { %794 = vmatprep.mubr.msk.f32.mxu0 %vm173_vm1, %v143_v16 }
  0x25   : > { %816 = vmatmul.mubr.msk.f32.gmra.mxu1 %vm173_vm1, %v158_v17 }
  0x26   : > { %818 = vmatprep.mubr.msk.f32.mxu1 %vm173_vm1, %v159_v18 }
  0x27   : > { %795 = vmatmul.mubr.msk.f32.gmra.mxu0 %vm173_vm1, %v144_v19 }
  0x28   : > { %797 = vmatprep.mubr.msk.f32.mxu0 %vm173_vm1, %v145_v20 }
  0x29   : > { %819 = vmatmul.mubr.msk.f32.gmra.mxu1 %vm173_vm1, %v160_v21 }
  0x2a   : > { %821 = vmatprep.mubr.msk.f32.mxu1 %vm173_vm1, %v161_v22 }
  0x2b   : > { %798 = vmatmul.mubr.msk.f32.gmra.mxu0 %vm173_vm1, %v146_v23 }
  0x2c   : > { %800 = vmatprep.mubr.msk.f32.mxu0 %vm173_vm1, %v147_v24 }
  0x2d   : > { %822 = vmatmul.mubr.msk.f32.gmra.mxu1 %vm173_vm1, %v162_v25 }
  0x2e   : > { %824 = vmatprep.mubr.msk.f32.mxu1 %vm173_vm1, %v163_v26 }
  0x2f   : > { %801 = vmatmul.mubr.msk.f32.gmra.mxu0 %vm173_vm1, %v148_v27 }
  0x30   : > { %803 = vmatprep.mubr.msk.f32.mxu0 %vm173_vm1, %v149_v28 }
  0x31   : > { %825 = vmatmul.mubr.msk.f32.gmra.mxu1 %vm173_vm1, %v164_v29 }
  0x32   : > { %827 = vmatprep.mubr.msk.f32.mxu1 %vm173_vm1, %v165_v30 }
  0x33   : > { %804 = vmatmul.mubr.msk.f32.gmra.mxu0 %vm173_vm1, %v150_v31 }
  0x34   : > { %806 = vmatprep.mubr.msk.f32.mxu0 %vm173_vm1, %v151_v32 }
  0x35   : > { %828 = vmatmul.mubr.msk.f32.gmra.mxu1 %vm173_vm1, %v166_v33 }
  0x36   : > { %830 = vmatprep.mubr.msk.f32.mxu1 %vm173_vm1, %v167_v34 }
  0x37   : > { %807 = vmatmul.mubr.msk.f32.gmra.mxu0 %vm173_vm1, %v152_v35 }
  0x39   : > { %831 = vmatmul.mubr.msk.f32.gmra.mxu1 %vm173_vm1, %v168_v36 }
  0xdb   : > { %v787_v37 = vpop.f32.mrf.mxu0 }
  0xdc   : > { %v566_v40 = vmul.f32 %v787_v37, %v787_v37  ;;  %v497_v45 = vsel %vm495_vm2, %v787_v37, 0.0 }
  0xdd   : > { %v336_v38 = vpop.f32.mrf.mxu0  ;;  %v966_v39 = vpop.f32.mrf.mxu1 }
  0xde   : > { %v496_v41 = vsel %vm495_vm2, %v336_v38, 0.0  ;;  %v565_v42 = vmul.f32 %v336_v38, %v336_v38  ;;  %v598_v50 = vsel %vm495_vm2, %v566_v40, 0.0 }
  0xdf   : > { %v790_v43 = vpop.f32.mrf.mxu0  ;;  %v969_v44 = vpop.f32.mrf.mxu1  ;;  %v498_v47 = vadd.f32 %v497_v45, %v496_v41 }
  0xe0   : > { %v597_v46 = vsel %vm495_vm2, %v565_v42, 0.0  ;;  %v568_v51 = vmul.f32 %v790_v43, %v790_v43  ;;  %v501_v57 = vsel %vm495_vm2, %v790_v43, 0.0 }
  0xe1   : > { %v346_v48 = vpop.f32.mrf.mxu0  ;;  %v973_v49 = vpop.f32.mrf.mxu1  ;;  %v599_v54 = vadd.f32 %v598_v50, %v597_v46 }
  0xe2   : > { %v499_v52 = vsel %vm495_vm2, %v346_v48, 0.0  ;;  %v567_v53 = vmul.f32 %v346_v48, %v346_v48  ;;  %v602_v63 = vsel %vm495_vm2, %v568_v51, 0.0 }
  0xe3   : > { %v500_v55 = vadd.f32 %v499_v52, %v498_v47  ;;  %v793_v56 = vpop.f32.mrf.mxu0  ;;  %v979_v62 = vpop.f32.mrf.mxu1 }
  0xe4   : > { %v600_v58 = vsel %vm495_vm2, %v567_v53, 0.0  ;;  %v570_v0 = vmul.f32 %v793_v56, %v793_v56  ;;  %v505_v6 = vsel %vm495_vm2, %v793_v56, 0.0 }
  0xe5   : > { %v601_v59 = vadd.f32 %v600_v58, %v599_v54  ;;  %v356_v60 = vpop.f32.mrf.mxu0  ;;  %v502_v61 = vadd.f32 %v501_v57, %v500_v55  ;;  %v985_v11 = vpop.f32.mrf.mxu1 }
  0xe6   : > { %v503_v1 = vsel %vm495_vm2, %v356_v60, 0.0  ;;  %v569_v2 = vmul.f32 %v356_v60, %v356_v60  ;;  %v606_v12 = vsel %vm495_vm2, %v570_v0, 0.0 }
  0xe7   : > { %v504_v3 = vadd.f32 %v503_v1, %v502_v61  ;;  %v603_v4 = vadd.f32 %v602_v63, %v601_v59  ;;  %v796_v5 = vpop.f32.mrf.mxu0  ;;  %v991_v24 = vpop.f32.mrf.mxu1 }
  0xe8   : > { %v604_v7 = vsel %vm495_vm2, %v569_v2, 0.0  ;;  %v572_v13 = vmul.f32 %v796_v5, %v796_v5  ;;  %v509_v19 = vsel %vm495_vm2, %v796_v5, 0.0 }
  0xe9   : > { %v605_v8 = vadd.f32 %v604_v7, %v603_v4  ;;  %v366_v9 = vpop.f32.mrf.mxu0  ;;  %v506_v10 = vadd.f32 %v505_v6, %v504_v3  ;;  %v997_v37 = vpop.f32.mrf.mxu1 }
  0xea   : > { %v507_v14 = vsel %vm495_vm2, %v366_v9, 0.0  ;;  %v571_v15 = vmul.f32 %v366_v9, %v366_v9  ;;  %v610_v25 = vsel %vm495_vm2, %v572_v13, 0.0  ;;  %v581_v13 = vmul.f32 %v969_v44, %v969_v44 }
  0xeb   : > { %v508_v16 = vadd.f32 %v507_v14, %v506_v10  ;;  %v607_v17 = vadd.f32 %v606_v12, %v605_v8  ;;  %v799_v18 = vpop.f32.mrf.mxu0  ;;  %v446_v53 = vpop.f32.mrf.mxu1 }
  0xec   : > { %v608_v20 = vsel %vm495_vm2, %v571_v15, 0.0  ;;  %v574_v26 = vmul.f32 %v799_v18, %v799_v18  ;;  %v513_v32 = vsel %vm495_vm2, %v799_v18, 0.0  ;;  %v582_v18 = vmul.f32 %v966_v39, %v966_v39 }
  0xed   : > { %v609_v21 = vadd.f32 %v608_v20, %v607_v17  ;;  %v376_v22 = vpop.f32.mrf.mxu0  ;;  %v510_v23 = vadd.f32 %v509_v19, %v508_v16  ;;  %v823_v3 = vpop.f32.mrf.mxu1  ;;  %v527_v19 = vsel %vm495_vm2, %v969_v44, 0.0  ;;  %v531_v44 = vsel %vm495_vm2, %v979_v62, 0.0 }
  0xee   : > { %v511_v27 = vsel %vm495_vm2, %v376_v22, 0.0  ;;  %v573_v28 = vmul.f32 %v376_v22, %v376_v22  ;;  %v614_v38 = vsel %vm495_vm2, %v574_v26, 0.0  ;;  %v529_v22 = vsel %vm495_vm2, %v966_v39, 0.0 }
  0xef   : > { %v512_v29 = vadd.f32 %v511_v27, %v510_v23  ;;  %v611_v30 = vadd.f32 %v610_v25, %v609_v21  ;;  %v802_v31 = vpop.f32.mrf.mxu0  ;;  %v456_v16 = vpop.f32.mrf.mxu1  ;;  %v628_v23 = vsel %vm495_vm2, %v581_v13, 0.0  ;;  %v583_v25 = vmul.f32 %v979_v62, %v979_v62 }
  0xf0   : > { %v612_v33 = vsel %vm495_vm2, %v573_v28, 0.0  ;;  %v576_v40 = vmul.f32 %v802_v31, %v802_v31  ;;  %v517_v47 = vsel %vm495_vm2, %v802_v31, 0.0  ;;  %v533_v39 = vsel %vm495_vm2, %v973_v49, 0.0 }
  0xf1   : > { %v613_v34 = vadd.f32 %v612_v33, %v611_v30  ;;  %v386_v35 = vpop.f32.mrf.mxu0  ;;  %v514_v36 = vadd.f32 %v513_v32, %v512_v29  ;;  %v826_v28 = vpop.f32.mrf.mxu1  ;;  %v630_v29 = vsel %vm495_vm2, %v582_v18, 0.0  ;;  %v584_v30 = vmul.f32 %v973_v49, %v973_v49 }
  0xf2   : > { %v515_v41 = vsel %vm495_vm2, %v386_v35, 0.0  ;;  %v575_v42 = vmul.f32 %v386_v35, %v386_v35  ;;  %v618_v54 = vsel %vm495_vm2, %v576_v40, 0.0  ;;  %v632_v33 = vsel %vm495_vm2, %v583_v25, 0.0 }
  0xf3   : > { %v516_v43 = vadd.f32 %v515_v41, %v514_v36  ;;  %v615_v45 = vadd.f32 %v614_v38, %v613_v34  ;;  %v805_v46 = vpop.f32.mrf.mxu0  ;;  %v585_v34 = vmul.f32 %v991_v24, %v991_v24  ;;  %v466_v38 = vpop.f32.mrf.mxu1  ;;  %v634_v40 = vsel %vm495_vm2, %v584_v30, 0.0 }
  0xf4   : > { %v616_v48 = vsel %vm495_vm2, %v575_v42, 0.0  ;;  %v578_v55 = vmul.f32 %v805_v46, %v805_v46  ;;  %v521_v61 = vsel %vm495_vm2, %v805_v46, 0.0  ;;  %v586_v41 = vmul.f32 %v985_v11, %v985_v11 }
  0xf5   : > { %v617_v50 = vadd.f32 %v616_v48, %v615_v45  ;;  %v396_v51 = vpop.f32.mrf.mxu0  ;;  %v518_v52 = vadd.f32 %v517_v47, %v516_v43  ;;  %v535_v62 = vsel %vm495_vm2, %v991_v24, 0.0  ;;  %v537_v49 = vsel %vm495_vm2, %v985_v11, 0.0 }
  0xf6   : > { %v519_v56 = vsel %vm495_vm2, %v396_v51, 0.0  ;;  %v577_v57 = vmul.f32 %v396_v51, %v396_v51  ;;  %v622_v4 = vsel %vm495_vm2, %v578_v55, 0.0  ;;  %v636_v45 = vsel %vm495_vm2, %v585_v34, 0.0 }
  0xf7   : > { %v520_v58 = vadd.f32 %v519_v56, %v518_v52  ;;  %v619_v59 = vadd.f32 %v618_v54, %v617_v50  ;;  %v808_v60 = vpop.f32.mrf.mxu0  ;;  %v587_v46 = vmul.f32 %v446_v53, %v446_v53  ;;  %v829_v50 = vpop.f32.mrf.mxu1  ;;  %v638_v51 = vsel %vm495_vm2, %v586_v41, 0.0 }
  0xf8   : > { %v620_v63 = vsel %vm495_vm2, %v577_v57, 0.0  ;;  %v580_v5 = vmul.f32 %v808_v60, %v808_v60  ;;  %v525_v10 = vsel %vm495_vm2, %v808_v60, 0.0  ;;  %v588_v52 = vmul.f32 %v997_v37, %v997_v37 }
  0xf9   : > { %v621_v0 = vadd.f32 %v620_v63, %v619_v59  ;;  %v406_v1 = vpop.f32.mrf.mxu0  ;;  %v522_v2 = vadd.f32 %v521_v61, %v520_v58  ;;  %v539_v54 = vsel %vm495_vm2, %v446_v53, 0.0  ;;  %v541_v56 = vsel %vm495_vm2, %v997_v37, 0.0  ;;  %v476_v60 = vpop.f32.mrf.mxu1 }
  0xfa   : > { %v523_v6 = vsel %vm495_vm2, %v406_v1, 0.0  ;;  %v579_v7 = vmul.f32 %v406_v1, %v406_v1  ;;  %v626_v17 = vsel %vm495_vm2, %v580_v5, 0.0  ;;  %v640_v11 = vsel %vm495_vm2, %v587_v46, 0.0 }
  0xfb   : > { %v524_v8 = vadd.f32 %v523_v6, %v522_v2  ;;  %v623_v9 = vadd.f32 %v622_v4, %v621_v0  ;;  %v589_v57 = vmul.f32 %v456_v16, %v456_v16  ;;  %v642_v61 = vsel %vm495_vm2, %v588_v52, 0.0 }
  0xfc   : > { %v624_v12 = vsel %vm495_vm2, %v579_v7, 0.0  ;;  %v590_v63 = vmul.f32 %v823_v3, %v823_v3  ;;  %v543_v0 = vsel %vm495_vm2, %v456_v16, 0.0  ;;  %v545_v53 = vsel %vm495_vm2, %v823_v3, 0.0  ;;  %v832_v7 = vpop.f32.mrf.mxu1 }
  0xfd   : > { %v526_v14 = vadd.f32 %v525_v10, %v524_v8  ;;  %v625_v15 = vadd.f32 %v624_v12, %v623_v9  ;;  %v644_v4 = vsel %vm495_vm2, %v589_v57, 0.0  ;;  %v591_v5 = vmul.f32 %v466_v38, %v466_v38 }
  0xfe   : > { %v646_v8 = vsel %vm495_vm2, %v590_v63, 0.0  ;;  %v592_v9 = vmul.f32 %v826_v28, %v826_v28  ;;  %v547_v10 = vsel %vm495_vm2, %v466_v38, 0.0  ;;  %v593_v16 = vmul.f32 %v476_v60, %v476_v60  ;;  %v486_v18 = vpop.f32.mrf.mxu1 }
  0xff   : > { %v627_v20 = vadd.f32 %v626_v17, %v625_v15  ;;  %v528_v21 = vadd.f32 %v527_v19, %v526_v14  ;;  %v549_v14 = vsel %vm495_vm2, %v826_v28, 0.0  ;;  %v648_v15 = vsel %vm495_vm2, %v591_v5, 0.0 }
 0x100   : > { %v650_v19 = vsel %vm495_vm2, %v592_v9, 0.0  ;;  %v553_v25 = vsel %vm495_vm2, %v829_v50, 0.0 }
 0x101   : > { %v629_v26 = vadd.f32 %v628_v23, %v627_v20  ;;  %v530_v27 = vadd.f32 %v529_v22, %v528_v21  ;;  %v594_v20 = vmul.f32 %v829_v50, %v829_v50  ;;  %v551_v21 = vsel %vm495_vm2, %v476_v60, 0.0 }
 0x103   : > { %v532_v31 = vadd.f32 %v531_v44, %v530_v27  ;;  %v631_v32 = vadd.f32 %v630_v29, %v629_v26  ;;  %v652_v26 = vsel %vm495_vm2, %v593_v16, 0.0  ;;  %v595_v27 = vmul.f32 %v486_v18, %v486_v18 }
 0x104   : > { %v654_v30 = vsel %vm495_vm2, %v594_v20, 0.0  ;;  %v596_v44 = vmul.f32 %v832_v7, %v832_v7 }
 0x105   : > { %v633_v35 = vadd.f32 %v632_v33, %v631_v32  ;;  %v534_v36 = vadd.f32 %v533_v39, %v532_v31  ;;  %v555_v31 = vsel %vm495_vm2, %v486_v18, 0.0  ;;  %v557_v33 = vsel %vm495_vm2, %v832_v7, 0.0 }
 0x106   : > { %v656_v34 = vsel %vm495_vm2, %v595_v27, 0.0  ;;  %v658_v38 = vsel %vm495_vm2, %v596_v44, 0.0 }
 0x107   : > { %v536_v42 = vadd.f32 %v535_v62, %v534_v36  ;;  %v635_v43 = vadd.f32 %v634_v40, %v633_v35 }
 0x109   : > { %v637_v47 = vadd.f32 %v636_v45, %v635_v43  ;;  %v538_v48 = vadd.f32 %v537_v49, %v536_v42 }
 0x10b   : > { %v540_v55 = vadd.f32 %v539_v54, %v538_v48  ;;  %v639_v24 = vadd.f32 %v638_v51, %v637_v47  ;;  %v666_v54 = vld [vmem:[%s1076_s2] sm:$0x3] }
 0x10d   : > { %v641_v58 = vadd.f32 %v640_v11, %v639_v24  ;;  %v542_v59 = vadd.f32 %v541_v56, %v540_v55 }
 0x10f   : > { %v544_v1 = vadd.f32 %v543_v0, %v542_v59  ;;  %v643_v2 = vadd.f32 %v642_v61, %v641_v58 }
 0x111   : > { %v645_v6 = vadd.f32 %v644_v4, %v643_v2  ;;  %v546_v37 = vadd.f32 %v545_v53, %v544_v1 }
 0x113   : > { %v548_v12 = vadd.f32 %v547_v10, %v546_v37  ;;  %v647_v13 = vadd.f32 %v646_v8, %v645_v6 }
 0x115   : > { %v649_v17 = vadd.f32 %v648_v15, %v647_v13  ;;  %v550_v3 = vadd.f32 %v549_v14, %v548_v12 }
 0x117   : > { %v552_v22 = vadd.f32 %v551_v21, %v550_v3  ;;  %v651_v23 = vadd.f32 %v650_v19, %v649_v17 }
 0x119   : > { %v653_v29 = vadd.f32 %v652_v26, %v651_v23  ;;  %v554_v28 = vadd.f32 %v553_v25, %v552_v22 }
 0x11b   : > { %v556_v32 = vadd.f32 %v555_v31, %v554_v28  ;;  %v655_v39 = vadd.f32 %v654_v30, %v653_v29 }
 0x11d   : > { %v558_v35 = vadd.f32 %v557_v33, %v556_v32  ;;  %v657_v36 = vadd.f32 %v656_v34, %v655_v39 }
 0x11f   : > { %v559_v40 = vrot.slane %v558_v35, 4  ;;  %v659_v41 = vadd.f32 %v658_v38, %v657_v36 }
 0x121   : > { %v560_v62 = vadd.f32 %v559_v40, %v558_v35  ;;  %v660_v42 = vrot.slane %v659_v41, 4 }
 0x123   : > { %v561_v43 = vrot.slane %v560_v62, 2  ;;  %v661_v49 = vadd.f32 %v660_v42, %v659_v41 }
 0x125   : > { %v562_v45 = vadd.f32 %v561_v43, %v560_v62  ;;  %v662_v46 = vrot.slane %v661_v49, 2 }
 0x127   : > { %v563_v47 = vrot.slane %v562_v45, 1  ;;  %v663_v48 = vadd.f32 %v662_v46, %v661_v49 }
 0x129   : > { %v664_v50 = vrot.slane %v663_v48, 1  ;;  %v564_v51 = vadd.f32 %v563_v47, %v562_v45 }
 0x12b   : > { %v665_v52 = vadd.f32 %v664_v50, %v663_v48 }
 0x12d   : > { %v668_v55 = vsel %vm667_vm3, %v564_v51, %v665_v52 }
 0x12e   : > { %v669_v24 = vadd.f32 %v668_v55, %v666_v54 }
 0x130   : > { %671 = vst.msk [vmem:[%s1076_s2] sm:$0x3] %vm670_vm4, %v669_v24 }
 0x131 PF: > { %s12_s9 = sadd.s32 1, %s856_s9  }
 0x132   : > { %p9_p5 = scmp.ge.s32.totalorder %s12_s9, 4  }
 0x134   :  { %11 = sbr.rel (!%p9_p5) target bundleno = 1 (0x1), region = 58 }

</bundles_post_ra>
